<compile_context>
chip_gen: v6e
topology: v6e:2x2x1
jax: 0.10.0
libtpu: 0.0.40
codegen_flags: <defaults>
</compile_context>

<pallas_src>
import functools

import jax
import jax.numpy as jnp
import numpy as np
from jax.experimental import pallas as pl
from jax.experimental.pallas import tpu as pltpu


def attention_kernel(x_ref, qkv_wt_ref, proj_wt_ref, proj_b_ref, o_ref,
                     *, num_heads):
    bb, N, C = x_ref.shape            # bb = batches handled by this grid step
    hd = C // num_heads
    G = bb * num_heads

    # All tokens of this block at once: (bb*N, C) rows, C on the lane axis.
    x = x_ref[...].reshape(bb * N, C).astype(jnp.bfloat16)

    # Fused QKV 1x1 conv == per-token matmul; bf16 MXU inputs, f32 accumulation.
    # The softmax scale is already folded into the Q columns of the weight.
    qkv = jax.lax.dot_general(
        x, qkv_wt_ref[...],
        (((1,), (0,)), ((), ())),
        preferred_element_type=jnp.float32)                       # (bb*N, 3C)

    def split_heads(cols):            # (bb*N, C) -> (G, N, hd)
        # bf16 BEFORE the relayout so the transpose moves half the bytes.
        t = cols.astype(jnp.bfloat16).reshape(bb, N, num_heads, hd)
        t = jnp.transpose(t, (0, 2, 1, 3))                        # (bb, nh, N, hd)
        return t.reshape(G, N, hd)

    # Column layout of the fused qkv output matches the torch reshape
    # (B, 3, nh, hd, N): q|k|v are contiguous C-wide (lane-aligned) column
    # blocks, each head-major / hd-minor inside its block.
    q = split_heads(qkv[:, 0:C])
    k = split_heads(qkv[:, C:2 * C])
    v = split_heads(qkv[:, 2 * C:3 * C])

    # Batched attention over G = bb*num_heads (leading batch dim -> MXU).
    # NOTE: at demo N=64 the score lane dim is half-empty; real TinyViT N>=128
    # makes this lane-dense automatically, so no packing is done here.
    s = jnp.einsum('gqd,gkd->gqk', q, k,
                   preferred_element_type=jnp.float32)            # (G, N, N)
    s = s - jnp.max(s, axis=-1, keepdims=True)
    p = jnp.exp(s)                                                # EUP slot
    p = p * pl.reciprocal(jnp.sum(p, axis=-1, keepdims=True), approx=True)

    o = jnp.einsum('gqk,gkd->gqd', p.astype(jnp.bfloat16), v,
                   preferred_element_type=jnp.float32)            # (G, N, hd)
    o = o.astype(jnp.bfloat16)

    # Output 1x1 conv with the head-merge folded in: per-head matmul into the
    # lane-dense C output, then an add-reduce over heads (no transpose copy).
    w = proj_wt_ref[...]                                          # (nh, hd, C)
    if bb > 1:
        w = jnp.broadcast_to(w[None], (bb, num_heads, hd, C)).reshape(G, hd, C)
    yh = jnp.einsum('gnd,gdc->gnc', o, w,
                    preferred_element_type=jnp.float32)           # (G, N, C)
    yh = yh.reshape(bb, num_heads, N, C)
    y = yh[:, 0]
    for h in range(1, num_heads):                                 # few VPU adds
        y = y + yh[:, h]
    y = y + proj_b_ref[...]                                       # (bb, N, C)

    o_ref[...] = y.astype(o_ref.dtype)


def prepare_attention_params(params, num_heads):
    """One-time (parameter-load-time) transform of torch-layout weights into
    kernel-ready layout: transpose to (K, N_out), fold softmax scale into the
    Q columns, reshape proj to (nh, hd, C), cast to bf16."""
    qkv_w = params['qkv_w']                       # (3C, C) torch layout
    proj_w = params['proj_w']                     # (C, C)
    proj_b = params['proj_b']                     # (C,)
    C = qkv_w.shape[1]
    hd = C // num_heads
    scale = float(hd) ** -0.5

    qkv_wt = qkv_w.T                              # (C, 3C): [q | k | v] blocks
    qkv_wt = jnp.concatenate([qkv_wt[:, :C] * scale, qkv_wt[:, C:]], axis=1)
    return dict(
        qkv_wt=qkv_wt.astype(jnp.bfloat16),                       # (C, 3C)
        proj_wt=proj_w.T.reshape(num_heads, hd, C).astype(jnp.bfloat16),
        proj_b=proj_b.reshape(1, C).astype(jnp.float32),
    )


def attention_forward(x_nchw, prep, *, num_heads, batch_block=1):
    """Attention.forward on an NCHW tensor via a fused Pallas kernel.

    batch_block = batches per grid step. 1 gives the most grid parallelism
    (v7x megacore); raise it to grow the matmul M dimension (v6e/v7x MXU
    occupancy) when B is large.
    """
    B, C, H, W = x_nchw.shape
    N = H * W
    assert B % batch_block == 0

    # NCHW -> (B, N, C) tokens (layout plumbing done once in the wrapper).
    x = jnp.transpose(x_nchw.reshape(B, C, N), (0, 2, 1))

    kernel = functools.partial(attention_kernel, num_heads=num_heads)

    out = pl.pallas_call(
        kernel,
        out_shape=jax.ShapeDtypeStruct((B, N, C), x.dtype),
        grid=(B // batch_block,),
        in_specs=[
            pl.BlockSpec((batch_block, N, C), lambda b: (b, 0, 0)),
            pl.BlockSpec(prep['qkv_wt'].shape, lambda b: (0, 0)),
            pl.BlockSpec(prep['proj_wt'].shape, lambda b: (0, 0, 0)),
            pl.BlockSpec(prep['proj_b'].shape, lambda b: (0, 0)),
        ],
        out_specs=pl.BlockSpec((batch_block, N, C), lambda b: (b, 0, 0)),
        compiler_params=pltpu.CompilerParams(
            dimension_semantics=("parallel",)),
    )(x, prep['qkv_wt'], prep['proj_wt'], prep['proj_b'])

    return jnp.transpose(out, (0, 2, 1)).reshape(B, C, H, W)


def init_attention_params(key, dim, num_heads):
    """Synthetic params with shapes from the module __init__ (qkv_bias=False)."""
    del num_heads
    k1, k2, k3 = jax.random.split(key, 3)
    return dict(
        qkv_w=0.05 * jax.random.normal(k1, (3 * dim, dim), jnp.float32),
        proj_w=0.05 * jax.random.normal(k2, (dim, dim), jnp.float32),
        proj_b=0.05 * jax.random.normal(k3, (dim,), jnp.float32),
    )


# ---------------- pure-JAX reference (mirrors the PyTorch forward) -----------
def _ref_attention(x_nchw, params, num_heads):
    B, C, H, W = x_nchw.shape
    N = H * W
    hd = C // num_heads
    scale = hd ** -0.5
    x = x_nchw.reshape(B, C, N)
    qkv = jnp.einsum('oc,bcn->bon', params['qkv_w'], x)          # (B, 3C, N)
    qkv = jnp.transpose(qkv.reshape(B, 3, num_heads, hd, N), (1, 0, 2, 4, 3))
    q, k, v = qkv[0], qkv[1], qkv[2]                             # (B, nh, N, hd)
    attn = jax.nn.softmax((q @ jnp.swapaxes(k, -1, -2)) * scale, axis=-1)
    out = jnp.swapaxes(attn @ v, -1, -2).reshape(B, C, N)        # (B, C, N)
    out = (jnp.einsum('oc,bcn->bon', params['proj_w'], out)
           + params['proj_b'][None, :, None])
    return out.reshape(B, C, H, W)


if __name__ == "__main__":
    # Small shapes consistent with the module: dim=128 (lane-dense channel
    # axis), 4 heads (head_dim=32), 8x8 spatial, batch 2 (-> 2 parallel grid
    # steps, one per TensorCore on v7x).
    B, C, H, W = 2, 128, 8, 8
    num_heads = 4

    key = jax.random.PRNGKey(0)
    kx, kp = jax.random.split(key)
    x = jax.random.normal(kx, (B, C, H, W), jnp.float32)
    params = init_attention_params(kp, C, num_heads)

    # Kernel-ready weights are prepared ONCE (parameter-load time), not per call.
    prep = prepare_attention_params(params, num_heads)

    out = attention_forward(x, prep, num_heads=num_heads)
    out = jax.block_until_ready(out)
    assert out.shape == (B, C, H, W) and out.dtype == jnp.float32

    # sanity check against the pure-JAX/f32 reference (bf16 MXU + approx
    # reciprocal -> loose tolerance).
    ref = _ref_attention(x, params, num_heads)
    np.testing.assert_allclose(np.asarray(out), np.asarray(ref),
                               rtol=2e-2, atol=2e-2)

    print("KERNEL_OK")
</pallas_src>

<mosaic_0001>
module attributes {stable_mosaic.version = 11 : i64} {
  func.func @attention_kernel(%arg0: i32, %arg1: memref<1x64x128xf32, #tpu.memory_space<vmem>>, %arg2: memref<128x384xbf16, #tpu.memory_space<vmem>>, %arg3: memref<4x32x128xbf16, #tpu.memory_space<vmem>>, %arg4: memref<1x128xf32, #tpu.memory_space<vmem>>, %arg5: memref<1x64x128xf32, #tpu.memory_space<vmem>>) attributes {dimension_semantics = [#tpu.dimension_semantics<parallel>], iteration_bounds = array<i64: 2>, scalar_prefetch = 0 : i64, scratch_operands = 0 : i64, tpu.core_type = #tpu.core_type<tc>, window_params = [{transform_indices = @transform_0, window_bounds = array<i64: 1, 64, 128>}, {pipeline_mode = #tpu.pipeline_mode<synchronous>, transform_indices = @transform_1, window_bounds = array<i64: 128, 384>}, {pipeline_mode = #tpu.pipeline_mode<synchronous>, transform_indices = @transform_2, window_bounds = array<i64: 4, 32, 128>}, {pipeline_mode = #tpu.pipeline_mode<synchronous>, transform_indices = @transform_3, window_bounds = array<i64: 1, 128>}, {transform_indices = @transform_4, window_bounds = array<i64: 1, 64, 128>}]} {
    %c0 = arith.constant 0 : index
    %c0_0 = arith.constant 0 : index
    %c0_1 = arith.constant 0 : index
    %0 = vector.load %arg1[%c0, %c0_0, %c0_1] : memref<1x64x128xf32, #tpu.memory_space<vmem>>, vector<1x64x128xf32>
    %1 = vector.shape_cast %0 : vector<1x64x128xf32> to vector<64x128xf32>
    %2 = arith.truncf %1 : vector<64x128xf32> to vector<64x128xbf16>
    %c0_2 = arith.constant 0 : index
    %c0_3 = arith.constant 0 : index
    %3 = vector.load %arg2[%c0_2, %c0_3] : memref<128x384xbf16, #tpu.memory_space<vmem>>, vector<128x384xbf16>
    %cst = arith.constant dense<0.000000e+00> : vector<64x384xf32>
    %4 = tpu.matmul %2, %3, %cst {dimension_numbers = #tpu.dot_dimension_numbers<[1], [0], [0], [1], [0, 0, 1, 1], [], []>} : vector<64x128xbf16>, vector<128x384xbf16>, vector<64x384xf32> -> vector<64x384xf32>
    %5 = vector.extract_strided_slice %4 {offsets = [0, 0], sizes = [64, 128], strides = [1, 1]} : vector<64x384xf32> to vector<64x128xf32>
    %6 = arith.truncf %5 : vector<64x128xf32> to vector<64x128xbf16>
    %7 = vector.shape_cast %6 : vector<64x128xbf16> to vector<1x64x4x32xbf16>
    %8 = tpu.transpose %7, [0, 2, 1, 3] : vector<1x64x4x32xbf16> -> vector<1x4x64x32xbf16>
    %9 = vector.shape_cast %8 : vector<1x4x64x32xbf16> to vector<4x64x32xbf16>
    %10 = vector.extract_strided_slice %4 {offsets = [0, 128], sizes = [64, 128], strides = [1, 1]} : vector<64x384xf32> to vector<64x128xf32>
    %11 = arith.truncf %10 : vector<64x128xf32> to vector<64x128xbf16>
    %12 = vector.shape_cast %11 : vector<64x128xbf16> to vector<1x64x4x32xbf16>
    %13 = tpu.transpose %12, [0, 2, 1, 3] : vector<1x64x4x32xbf16> -> vector<1x4x64x32xbf16>
    %14 = vector.shape_cast %13 : vector<1x4x64x32xbf16> to vector<4x64x32xbf16>
    %15 = vector.extract_strided_slice %4 {offsets = [0, 256], sizes = [64, 128], strides = [1, 1]} : vector<64x384xf32> to vector<64x128xf32>
    %16 = arith.truncf %15 : vector<64x128xf32> to vector<64x128xbf16>
    %17 = vector.shape_cast %16 : vector<64x128xbf16> to vector<1x64x4x32xbf16>
    %18 = tpu.transpose %17, [0, 2, 1, 3] : vector<1x64x4x32xbf16> -> vector<1x4x64x32xbf16>
    %19 = vector.shape_cast %18 : vector<1x4x64x32xbf16> to vector<4x64x32xbf16>
    "tpu.trace_start"() <{level = 10 : i32, message = "gqd,gkd->gqk"}> : () -> ()
    %cst_4 = arith.constant dense<0.000000e+00> : vector<4x64x64xf32>
    %20 = tpu.matmul %9, %14, %cst_4 {dimension_numbers = #tpu.dot_dimension_numbers<[2], [2], [1], [1], [0, 0, 0, 1, 1, 1], [0], [0]>} : vector<4x64x32xbf16>, vector<4x64x32xbf16>, vector<4x64x64xf32> -> vector<4x64x64xf32>
    "tpu.trace_stop"() : () -> ()
    %cst_5 = arith.constant dense<0xFF800000> : vector<4x64xf32>
    %21 = vector.multi_reduction <maximumf>, %20, %cst_5 [2] : vector<4x64x64xf32> to vector<4x64xf32>
    %22 = vector.shape_cast %21 : vector<4x64xf32> to vector<4x64x1xf32>
    %23 = vector.broadcast %22 : vector<4x64x1xf32> to vector<4x64x64xf32>
    %24 = arith.subf %20, %23 : vector<4x64x64xf32>
    %25 = math.exp %24 : vector<4x64x64xf32>
    %cst_6 = arith.constant dense<0.000000e+00> : vector<4x64xf32>
    %26 = vector.multi_reduction <add>, %25, %cst_6 [2] : vector<4x64x64xf32> to vector<4x64xf32>
    %27 = vector.shape_cast %26 : vector<4x64xf32> to vector<4x64x1xf32>
    %28 = tpu.reciprocal %27 {approx = true} : vector<4x64x1xf32> -> vector<4x64x1xf32>
    %29 = vector.broadcast %28 : vector<4x64x1xf32> to vector<4x64x64xf32>
    %30 = arith.mulf %25, %29 : vector<4x64x64xf32>
    %31 = arith.truncf %30 : vector<4x64x64xf32> to vector<4x64x64xbf16>
    "tpu.trace_start"() <{level = 10 : i32, message = "gqk,gkd->gqd"}> : () -> ()
    %cst_7 = arith.constant dense<0.000000e+00> : vector<4x64x32xf32>
    %32 = tpu.matmul %31, %19, %cst_7 {dimension_numbers = #tpu.dot_dimension_numbers<[2], [1], [1], [2], [0, 0, 0, 1, 1, 2], [0], [0]>} : vector<4x64x64xbf16>, vector<4x64x32xbf16>, vector<4x64x32xf32> -> vector<4x64x32xf32>
    "tpu.trace_stop"() : () -> ()
    %33 = arith.truncf %32 : vector<4x64x32xf32> to vector<4x64x32xbf16>
    %c0_8 = arith.constant 0 : index
    %c0_9 = arith.constant 0 : index
    %c0_10 = arith.constant 0 : index
    %34 = vector.load %arg3[%c0_8, %c0_9, %c0_10] : memref<4x32x128xbf16, #tpu.memory_space<vmem>>, vector<4x32x128xbf16>
    "tpu.trace_start"() <{level = 10 : i32, message = "gnd,gdc->gnc"}> : () -> ()
    %cst_11 = arith.constant dense<0.000000e+00> : vector<4x64x128xf32>
    %35 = tpu.matmul %33, %34, %cst_11 {dimension_numbers = #tpu.dot_dimension_numbers<[2], [1], [1], [2], [0, 0, 0, 1, 1, 2], [0], [0]>} : vector<4x64x32xbf16>, vector<4x32x128xbf16>, vector<4x64x128xf32> -> vector<4x64x128xf32>
    "tpu.trace_stop"() : () -> ()
    %36 = vector.shape_cast %35 : vector<4x64x128xf32> to vector<1x4x64x128xf32>
    %37 = vector.extract_strided_slice %36 {offsets = [0, 0, 0, 0], sizes = [1, 1, 64, 128], strides = [1, 1, 1, 1]} : vector<1x4x64x128xf32> to vector<1x1x64x128xf32>
    %38 = vector.shape_cast %37 : vector<1x1x64x128xf32> to vector<1x64x128xf32>
    %39 = vector.extract_strided_slice %36 {offsets = [0, 1, 0, 0], sizes = [1, 1, 64, 128], strides = [1, 1, 1, 1]} : vector<1x4x64x128xf32> to vector<1x1x64x128xf32>
    %40 = vector.shape_cast %39 : vector<1x1x64x128xf32> to vector<1x64x128xf32>
    %41 = arith.addf %38, %40 : vector<1x64x128xf32>
    %42 = vector.extract_strided_slice %36 {offsets = [0, 2, 0, 0], sizes = [1, 1, 64, 128], strides = [1, 1, 1, 1]} : vector<1x4x64x128xf32> to vector<1x1x64x128xf32>
    %43 = vector.shape_cast %42 : vector<1x1x64x128xf32> to vector<1x64x128xf32>
    %44 = arith.addf %41, %43 : vector<1x64x128xf32>
    %45 = vector.extract_strided_slice %36 {offsets = [0, 3, 0, 0], sizes = [1, 1, 64, 128], strides = [1, 1, 1, 1]} : vector<1x4x64x128xf32> to vector<1x1x64x128xf32>
    %46 = vector.shape_cast %45 : vector<1x1x64x128xf32> to vector<1x64x128xf32>
    %47 = arith.addf %44, %46 : vector<1x64x128xf32>
    %c0_12 = arith.constant 0 : index
    %c0_13 = arith.constant 0 : index
    %48 = vector.load %arg4[%c0_12, %c0_13] : memref<1x128xf32, #tpu.memory_space<vmem>>, vector<1x128xf32>
    %49 = vector.shape_cast %48 : vector<1x128xf32> to vector<1x1x128xf32>
    %50 = vector.broadcast %49 : vector<1x1x128xf32> to vector<1x64x128xf32>
    %51 = arith.addf %47, %50 : vector<1x64x128xf32>
    %c0_14 = arith.constant 0 : index
    %c0_15 = arith.constant 0 : index
    %c0_16 = arith.constant 0 : index
    %52 = vector.load %arg5[%c0_14, %c0_15, %c0_16] : memref<1x64x128xf32, #tpu.memory_space<vmem>>, vector<1x64x128xf32>
    tpu.vector_store %arg5[%c0_14, %c0_15, %c0_16], %51 {strides = array<i32>} : memref<1x64x128xf32, #tpu.memory_space<vmem>>, vector<1x64x128xf32>,
    return
  }
  func.func @transform_0(%arg0: i32) -> (i32, i32, i32) {
    %c0_i32 = arith.constant 0 : i32
    %c0_i32_0 = arith.constant 0 : i32
    %c0_i32_1 = arith.constant 0 : i32
    return %arg0, %c0_i32, %c0_i32_0 : i32, i32, i32
  }
  func.func @transform_1(%arg0: i32) -> (i32, i32) {
    %c0_i32 = arith.constant 0 : i32
    %c0_i32_0 = arith.constant 0 : i32
    %c0_i32_1 = arith.constant 0 : i32
    return %c0_i32, %c0_i32_0 : i32, i32
  }
  func.func @transform_2(%arg0: i32) -> (i32, i32, i32) {
    %c0_i32 = arith.constant 0 : i32
    %c0_i32_0 = arith.constant 0 : i32
    %c0_i32_1 = arith.constant 0 : i32
    %c0_i32_2 = arith.constant 0 : i32
    return %c0_i32, %c0_i32_0, %c0_i32_1 : i32, i32, i32
  }
  func.func @transform_3(%arg0: i32) -> (i32, i32) {
    %c0_i32 = arith.constant 0 : i32
    %c0_i32_0 = arith.constant 0 : i32
    %c0_i32_1 = arith.constant 0 : i32
    return %c0_i32, %c0_i32_0 : i32, i32
  }
  func.func @transform_4(%arg0: i32) -> (i32, i32, i32) {
    %c0_i32 = arith.constant 0 : i32
    %c0_i32_0 = arith.constant 0 : i32
    %c0_i32_1 = arith.constant 0 : i32
    return %arg0, %c0_i32, %c0_i32_0 : i32, i32, i32
  }
}

</mosaic_0001>

<bundles_post_ra>
// kernel: tpu_custom_call.1
= control target key start
LH: loop header
LB: loop body
LE: loop exit
PB: predicated region body
PF: predicated region fallthrough
CT: control target
= control target key end

     0   :  { %9 = vsyncpa [#allocation3], 0  ;;  %s7943_s0 = inlined_call_operand.hbm [shape: f32[2,64,128], index: 0, kind: input, shape index: {}]   ;;  %s7944_s1 = inlined_call_operand.hbm [shape: bf16[128,384], index: 1, kind: input, shape index: {}]   ;;  %s7945_s2 = inlined_call_operand.hbm [shape: bf16[4,32,128], index: 2, kind: input, shape index: {}]   ;;  %s7946_s3 = inlined_call_operand.vmem [shape: f32[1,128], index: 3, kind: input, shape index: {}]   ;;  %s7947_s4 = inlined_call_operand.hbm [shape: f32[2,64,128], index: 4, kind: output, shape index: {}]  }
   0x1   :  { %11 = vsyncpa [#allocation3 + $0x1], 0 }
   0x2   :  { %12 = vsyncpa [#allocation6], 0 }
   0x3   :  { %13 = vsyncpa [#allocation4], 0 }
   0x4   :  { %15 = vsyncpa [#allocation4 + $0x1], 0  ;;  %s6276_s15 = smov 0   ;;  %s6278_s16 = smov 0  }
   0x5   :  { %s6280_s17 = smov 0   ;;  %s6282_s18 = smov 0  }
   0x6 LB: > { %s6297_s19 = sadd.s32 4294967295, %s6231_s18   ;;  %s5369_s20 = sadd.s32 4294967294, %s6231_s18   ;;  %s6231_s18 = sphi %s6282_s18, %s7993_s18   ;;  %s6227_s17 = sphi %s6280_s17, %s7992_s17   ;;  %s6223_s16 = sphi %s6278_s16, %s7991_s16   ;;  %s6219_s15 = sphi %s6276_s15, %s7990_s15  }
   0x7   : > { %p41_p0 = scmp.ne.s32.totalorder %s6223_s16, %s6219_s15  ;;  %p7948_p1 = scmp.eq.s32.totalorder %s6297_s19, 0 }
   0x8   : > { %p134_p3 = scmp.eq.s32.totalorder %s5369_s20, 1  ;;  %p5370_p5 = scmp.ge.s32.totalorder %s6231_s18, 1 }
   0x9   : > { %p6306_p4 = por %p7948_p1, %p41_p0  ;;  %p141_p7 = scmp.lt.s32.totalorder %s6231_s18, 3 }
   0xa   : > { %p6311_p6 = por %p134_p3, %p41_p0  ;;  %s6233_s24 = smov [#allocation5]  }
   0xb   : > { %s7955_s21 = scalar_select %p6306_p4, 1, 0 }
   0xc   : > { %s7956_s22 = scalar_select %p6311_p6, 1, 0 }
   0xd   : > { %p6316_p8 = pnand %p5370_p5, %p141_p7  ;;  %s153_s25 = sshll.u32 %s6233_s24, 4  ;;  %s154_s25 = int_to_ptr.vmem [resolvable:$true] %s153_s25 }
   0xe   : > { %s6234_s27 = smov [#allocation7]   ;;  %s6094_s29 = scalar_lea.vmem %s154_s25, 3072 }
   0xf   : > { %s7957_s23 = scalar_select %p6316_p8, 1, 0 }
  0x10   : > { %p5846_p9 = pneg %p6316_p8  ;;  %s166_s28 = sshll.u32 %s6234_s27, 4  ;;  %s167_s28 = int_to_ptr.vmem [resolvable:$true] %s166_s28 }
  0x11   : > { %p6095_p13 = scmp.ne.s32.totalorder %s154_s25, %s6094_s29  ;;  %p6102_p5 = scmp.lt.s32.totalorder %s154_s25, %s154_s25 }
  0x12   : > { %p6325_p11 = pnand %p5846_p9, %p7948_p1  ;;  %p6103_p7 = scmp.lt.s32.totalorder %s6094_s29, %s6094_s29 }
  0x14   : > { %p6085_p12 = pneg %p6325_p11  ;;  %p6104_p10 = por %p6103_p7, %p6102_p5 }
  0x16   : > { %p6097_p0 = pnand %p6095_p13, %p6085_p12 }
  0x18   : > { %p6098_p3 = pneg %p6097_p0 }
  0x1a   : > { %p6105_p9 = pnand %p6104_p10, %p6098_p3 }
  0x1c   : > { %6108 = shalt.err (!%p6105_p9)
}
  0x1d   : > { %s6235_s30 = smov 192   ;;  %s6236_s5 = smov 12  }
  0x1e   : > { %5849 = dma.hbm_to_vmem [thread:$0]  (!%p6325_p11), %s7944_s1, 3072, %s154_s25, [#allocation6], %s6235_s30, %s6235_s30, %s6236_s5  }
  0x1f   : > { %s6120_s8 = scalar_lea.vmem %s167_s28, 1024  ;;  %p6128_p2 = scmp.lt.s32.totalorder %s167_s28, %s167_s28 }
  0x20   : > { %p6121_p1 = scmp.ne.s32.totalorder %s167_s28, %s6120_s8  ;;  %p6129_p6 = scmp.lt.s32.totalorder %s6120_s8, %s6120_s8 }
  0x22   : > { %p6123_p13 = pnand %p6121_p1, %p6085_p12  ;;  %p6130_p5 = por %p6129_p6, %p6128_p2 }
  0x24   : > { %p6124_p0 = pneg %p6123_p13 }
  0x26   : > { %p6131_p10 = pnand %p6130_p5, %p6124_p0 }
  0x28   : > { %6134 = shalt.err (!%p6131_p10)
}
  0x29   : > { %s6237_s9 = smov 64   ;;  %s6238_s10 = smov 4  }
  0x2a   : > { %5852 = dma.hbm_to_vmem [thread:$0]  (!%p6325_p11), %s7945_s2, 1024, %s167_s28, [#allocation6], %s6237_s9, %s6237_s9, %s6238_s10  }
  0x2b   : > { %s6348_s13 = sadd.s32 1, %s6231_s18   ;;  %s28_s20 = sadd.s32 1, %s6227_s17 }
  0x2c   : > { %s25_s14 = ssub.s32 %s6231_s18, %s6348_s13  ;;  %p35_p2 = scmp.ne.s32.totalorder %s6227_s17, %s6223_s16 }
  0x2d   : > { %p26_p1 = scmp.eq.s32.totalorder %s25_s14, 0  ;;  %p36_p6 = scmp.eq.s32.totalorder %s6231_s18, 0 }
  0x2e   : > { %p7959_p3 = scmp.eq.s32.totalorder %s6297_s19, 1  ;;  %p5863_p9 = scmp.lt.s32.totalorder %s6231_s18, 2 }
  0x2f   : > { %s6357_s24 = scalar_select %p26_p1, %s6227_s17, %s28_s20  }
  0x30   : > { %p37_p12 = por %p36_p6, %p35_p2  ;;  %p6361_p7 = por %p7959_p3, %p35_p2 }
  0x31   : > { %s183_s26 = sand.u32 1, %s6227_s17   ;;  %s5516_s28 = sshll.u32 %s6231_s18, 10 }
  0x32   : > { %s7960_s25 = scalar_select %p6361_p7, 1, 0 }
  0x33   : > { %s5374_s27 = sshll.u32 %s183_s26, 6  ;;  %s6371_s5 = scalar_lea.hbm %s7943_s0, %s5516_s28 }
  0x34   : > { %s187_s6 = scalar_lea.vmem [#allocation2], %s5374_s27  ;;  %p6375_p11 = pnand %p5863_p9, %p37_p12 }
  0x35   : > { %s194_s7 = sshll.u32 %s187_s6, 4  ;;  %s6379_s9 = scalar_lea.sflag [#allocation3], %s183_s26  ;;  %s6373_s7 = int_to_ptr.vmem [resolvable:$true] %s194_s7 }
  0x36   : > { %s6135_s10 = scalar_lea.hbm %s6371_s5, 1024  ;;  %p6137_p0 = pneg %p6375_p11 }
  0x37   : > { %p6136_p13 = scmp.ne.s32.totalorder %s6371_s5, %s6135_s10  ;;  %s6140_s14 = scalar_lea.hbm %s7943_s0, 2048 }
  0x38   : > { %p6141_p1 = scmp.lt.s32.totalorder %s6371_s5, %s7943_s0  ;;  %p6142_p2 = scmp.lt.s32.totalorder %s6140_s14, %s6135_s10 }
  0x39   : > { %p6138_p5 = pnand %p6137_p0, %p6136_p13 }
  0x3a   : > { %p6143_p6 = por %p6142_p2, %p6141_p1 }
  0x3b   : > { %p6139_p10 = pneg %p6138_p5 }
  0x3d   : > { %p6144_p12 = pnand %p6143_p6, %p6139_p10 }
  0x3f   : > { %6147 = shalt.err (!%p6144_p12)
}
  0x40   : > { %s6148_s26 = scalar_lea.vmem %s6373_s7, 1024  ;;  %s6239_s28 = smov [#allocation2]  }
  0x41   : > { %p6149_p3 = scmp.ne.s32.totalorder %s6373_s7, %s6148_s26  ;;  %s6153_s29 = sshll.u32 %s6239_s28, 4  ;;  %s6154_s29 = int_to_ptr.vmem [resolvable:$false] %s6153_s29 }
  0x42   : > { %s6155_s30 = scalar_lea.vmem %s6154_s29, 2048  ;;  %p6156_p5 = scmp.lt.s32.totalorder %s6373_s7, %s6154_s29 }
  0x43   : > { %p6151_p9 = pnand %p6149_p3, %p6137_p0  ;;  %p6157_p7 = scmp.lt.s32.totalorder %s6155_s30, %s6148_s26 }
  0x45   : > { %p6152_p13 = pneg %p6151_p9  ;;  %p6158_p4 = por %p6157_p7, %p6156_p5 }
  0x47   : > { %p6159_p8 = pnand %p6158_p4, %p6152_p13 }
  0x49   : > { %6162 = shalt.err (!%p6159_p8)
}
  0x4a   : > { %s6240_s6 = smov 128   ;;  %s6241_s10 = smov 8  }
  0x4b   : > { %5856 = dma.hbm_to_vmem [thread:$0]  (!%p6375_p11), %s6371_s5, 1024, %s6373_s7, %s6379_s9, %s6240_s6, %s6240_s6, %s6241_s10  }
  0x4c   : > { %p7962_p0 = scmp.ne.s32.totalorder %s7957_s23, 0 }
  0x4e   : > { %206 = sbr.rel (%p7962_p0) target bundleno = 1591 (0x637), region = 36 }
  0x53   : > { %s6403_s11 = sand.u32 1, %s6223_s16   ;;  %p7963_p4 = scmp.ne.s32.totalorder %s7955_s21, 0 }
  0x54   : > { %s5378_s12 = sshll.u32 %s6403_s11, 6  ;;  %s209_s14 = scalar_lea.sflag [#allocation3], %s6403_s11 }
  0x55   : > { %s6409_s20 = scalar_lea.vmem [#allocation2], %s5378_s12 }
  0x56   : > { %6206 = dma.done.wait (%p7963_p4), %s209_s14, 1024  }
  0x57   : > { %6208 = vsyncadd (%p7963_p4), %s209_s14, 4294966272  ;;  %p7964_p8 = scmp.eq.s32.totalorder %s6297_s19, 0 }
  0x59   : > { %6210 = dma.done.wait (%p7964_p8), [#allocation6], 4096   ;;  %p7965_p7 = pmov %p7964_p8 }
  0x5a   : > { %v6242_v0 = vmov 0   ;;  %v5915_v1 = vld [vmem:[#allocation5 + $0xac] ss:$12 sps:$4 sm:$0xff]   ;;  %v5917_v2 = vld [vmem:[#allocation5 + $0xa8] ss:$12 sps:$4 sm:$0xff]   ;;  %v246_v8 = vld [vmem:[%s6409_s20] sm:$0xff] }
  0x5b   : > { %6212 = vsyncadd (%p7965_p7), [#allocation6], 4294963200  ;;  %450 = vmatprep.mubr.bf16.mxu0 %v6242_v0  ;;  %418 = vmatprep.subr.bf16.mxu0 %v5915_v1  ;;  %v5918_v3 = vld [vmem:[#allocation5 + $0x94] ss:$12 sps:$4 sm:$0xff]   ;;  %v5920_v4 = vld [vmem:[#allocation5 + $0x90] ss:$12 sps:$4 sm:$0xff]  }
  0x5c   : > { %419 = vmatpush1.bf16.msra.mxu0 %v5917_v2  ;;  %v5921_v5 = vld [vmem:[#allocation5 + $0x7c] ss:$12 sps:$4 sm:$0xff]   ;;  %v5923_v6 = vld [vmem:[#allocation5 + $0x78] ss:$12 sps:$4 sm:$0xff]   ;;  %v5926_v9 = vld [vmem:[#allocation5 + $0x60] ss:$12 sps:$4 sm:$0xff]   ;;  %v662_v2 = vlaneseq }
  0x5d   : > { %420 = vmatprep.subr.bf16.mxu0 %v5918_v3  ;;  %v5924_v7 = vld [vmem:[#allocation5 + $0x64] ss:$12 sps:$4 sm:$0xff]   ;;  %v247_v10 = vld [vmem:[%s6409_s20 + $0x8] sm:$0xff]  ;;  %v5930_v16 = vld [vmem:[#allocation5 + $0x34] ss:$12 sps:$4 sm:$0xff]   ;;  %s6243_s21 = smov 32  }
  0x5e   : > { %v5927_v11 = vld [vmem:[#allocation5 + $0x4c] ss:$12 sps:$4 sm:$0xff]   ;;  %v254_v12 = vpack.c.bf16 %v247_v10, %v246_v8  ;;  %v5929_v13 = vld [vmem:[#allocation5 + $0x48] ss:$12 sps:$4 sm:$0xff]   ;;  %v5939_v14 = vld [vmem:[#allocation5 + $0xb0] ss:$12 sps:$4 sm:$0xff]  }
  0x5f   : > { %v5940_v15 = vld [vmem:[#allocation5 + $0x98] ss:$12 sps:$4 sm:$0xff]   ;;  %5618 = vmatprep.subr.bf16.mxu1 %v5939_v14  ;;  %v5941_v17 = vld [vmem:[#allocation5 + $0x80] ss:$12 sps:$4 sm:$0xff]   ;;  %v5932_v18 = vld [vmem:[#allocation5 + $0x30] ss:$12 sps:$4 sm:$0xff]  }
  0x60   : > { %421 = vmatpush1.bf16.msra.mxu0 %v5920_v4  ;;  %5634 = vmatprep.mubr.bf16.mxu1 %v254_v12  ;;  %v5933_v19 = vld [vmem:[#allocation5 + $0x1c] ss:$12 sps:$4 sm:$0xff]   ;;  %v5935_v20 = vld [vmem:[#allocation5 + $0x18] ss:$12 sps:$4 sm:$0xff]   ;;  %v5938_v24 = vld [vmem:[#allocation5] ss:$12 sps:$4 sm:$0xff]  }
  0x61   : > { %422 = vmatprep.subr.bf16.mxu0 %v5921_v5  ;;  %5619 = vmatpush3.bf16.msra.mxu1 %v5939_v14  ;;  %v5942_v21 = vld [vmem:[#allocation5 + $0x68] ss:$12 sps:$4 sm:$0xff]   ;;  %v5936_v22 = vld [vmem:[#allocation5 + $0x4] ss:$12 sps:$4 sm:$0xff]   ;;  %v5945_v26 = vld [vmem:[#allocation5 + $0x20] ss:$12 sps:$4 sm:$0xff]  }
  0x62   : > { %5620 = vmatprep.subr.bf16.mxu1 %v5940_v15  ;;  %v5943_v23 = vld [vmem:[#allocation5 + $0x50] ss:$12 sps:$4 sm:$0xff]   ;;  %v5944_v25 = vld [vmem:[#allocation5 + $0x38] ss:$12 sps:$4 sm:$0xff]   ;;  %v5946_v30 = vld [vmem:[#allocation5 + $0x8] ss:$12 sps:$4 sm:$0xff]  }
  0x63   : > { %v248_v27 = vld [vmem:[%s6409_s20 + $0x10] sm:$0xff]  ;;  %v249_v28 = vld [vmem:[%s6409_s20 + $0x18] sm:$0xff]  ;;  %v250_v31 = vld [vmem:[%s6409_s20 + $0x20] sm:$0xff]  ;;  %s6244_s23 = smov 96   ;;  %s6245_s5 = smov 64   ;;  %v663_v8 = vshrl.u32 %v662_v2, 7 }
  0x64   : > { %423 = vmatpush1.bf16.msra.mxu0 %v5923_v6  ;;  %v255_v29 = vpack.c.bf16 %v249_v28, %v248_v27  ;;  %v251_v32 = vld [vmem:[%s6409_s20 + $0x28] sm:$0xff]  ;;  %v252_v34 = vld [vmem:[%s6409_s20 + $0x30] sm:$0xff]  ;;  %v253_v35 = vld [vmem:[%s6409_s20 + $0x38] sm:$0xff]  ;;  %v6246_v63 = vmov 1983009808   ;;  %v6492_v6 = vpack.i.b16 %v6242_v0, %v6242_v0  ;;  %vm3794_vm0 = vcmask 261120  }
  0x65   : > { %424 = vmatprep.subr.bf16.mxu0 %v5924_v7  ;;  %5621 = vmatpush3.bf16.msra.mxu1 %v5940_v15  ;;  %v256_v33 = vpack.c.bf16 %v251_v32, %v250_v31  ;;  %v257_v36 = vpack.c.bf16 %v253_v35, %v252_v34  ;;  %v660_v1 = vunpack.c.l.s4 %v6246_v63  ;;  %v6247_v3 = vmov 1934713408   ;;  %s7883_s9 = scalar_lea.vmem [#allocation8], %s5378_s12  ;;  %s5517_s26 = sshll.u32 %s6297_s19, 10 }
  0x66   : > { %5622 = vmatprep.subr.bf16.mxu1 %v5941_v17  ;;  %v691_v4 = vunpack.c.l.s4 %v6247_v3  ;;  %vm4151_vm1 = vcmask 523264   ;;  %s5277_s27 = sshll.u32 %s7883_s9, 4  ;;  %s7898_s30 = scalar_lea.hbm %s7947_s4, %s5517_s26  ;;  %s7892_s27 = int_to_ptr.vmem [resolvable:$true] %s5277_s27 }
  0x67   : > { %v661_v7 = vunpack.c.0.s8 %v660_v1  ;;  %s5264_s6 = scalar_lea.sflag [#allocation4], %s6403_s11  ;;  %s6163_s10 = scalar_lea.vmem %s7892_s27, 1024 }
  0x68   : > { %425 = vmatpush1.bf16.msra.mxu0 %v5926_v9  ;;  %p6164_p11 = scmp.ne.s32.totalorder %s7892_s27, %s6163_s10  ;;  %p7987_p10 = scmp.ne.s32.totalorder %s7960_s25, 0 }
  0x69   : > { %426 = vmatprep.subr.bf16.mxu0 %v5927_v11  ;;  %5623 = vmatpush3.bf16.msra.mxu1 %v5941_v17  ;;  %s6248_s19 = smov [#allocation8]  }
  0x6a   : > { %5624 = vmatprep.subr.bf16.mxu1 %v5942_v21  ;;  %p6165_p1 = pnand %p6164_p11, %p7987_p10  ;;  %s6167_s12 = sshll.u32 %s6248_s19, 4  ;;  %s6168_s12 = int_to_ptr.vmem [resolvable:$false] %s6167_s12 }
  0x6b   : > { %s6169_s14 = scalar_lea.vmem %s6168_s12, 2048  ;;  %p6170_p6 = scmp.lt.s32.totalorder %s7892_s27, %s6168_s12 }
  0x6c   : > { %427 = vmatpush1.bf16.msra.mxu0 %v5929_v13  ;;  %p6166_p2 = pneg %p6165_p1  ;;  %p6171_p12 = scmp.lt.s32.totalorder %s6169_s14, %s6163_s10 }
  0x6d   : > { %428 = vmatprep.subr.bf16.mxu0 %v5930_v16  ;;  %5625 = vmatpush3.bf16.msra.mxu1 %v5942_v21  ;;  %v692_v16 = vunpack.c.0.s8 %v691_v4 }
  0x6e   : > { %5626 = vmatprep.subr.bf16.mxu1 %v5943_v23  ;;  %p6172_p3 = por %p6171_p12, %p6170_p6 }
  0x70   : > { %429 = vmatpush1.bf16.msra.mxu0 %v5932_v18  ;;  %v6497_v18 = vsub.s32 %v661_v7, %v663_v8  ;;  %p6173_p9 = pnand %p6172_p3, %p6166_p2 }
  0x71   : > { %430 = vmatprep.subr.bf16.mxu0 %v5933_v19  ;;  %5627 = vmatpush3.bf16.msra.mxu1 %v5943_v23 }
  0x72   : > { %5628 = vmatprep.subr.bf16.mxu1 %v5944_v25 }
  0x74   : > { %431 = vmatpush1.bf16.msra.mxu0 %v5935_v20 }
  0x75   : > { %432 = vmatprep.subr.bf16.mxu0 %v5936_v22  ;;  %5629 = vmatpush3.bf16.msra.mxu1 %v5944_v25 }
  0x76   : > { %5630 = vmatprep.subr.bf16.mxu1 %v5945_v26 }
  0x78   : > { %433 = vmatpush1.bf16.msra.mxu0 %v5938_v24 }
  0x79   : > { %5631 = vmatpush3.bf16.msra.mxu1 %v5945_v26 }
  0x7a   : > { %5632 = vmatprep.subr.bf16.mxu1 %v5946_v30 }
  0x7b   : > { %451 = vmatmul.mubr.bf16.vlgmr.msra.gmra.mxu0 %v254_v12 }
  0x7c   : > { %460 = vmatprep.mubr.bf16.mxu0 %v6242_v0 }
  0x7d   : > { %5633 = vmatpush3.bf16.msra.mxu1 %v5946_v30 }
  0x80   : > { %5635 = vmatmul.mubr.bf16.vlgmr.msra.gmra.mxu1 %v255_v29 }
  0x81   : > { %5638 = vmatprep.mubr.bf16.mxu1 %v256_v33 }
  0x83   : > { %461 = vmatmul.mubr.bf16.gmra.mxu0 %v255_v29  ;;  %v6507_v29 = vsub.s32 %v692_v16, %v663_v8 }
  0x84   : > { %470 = vmatprep.mubr.bf16.mxu0 %v6242_v0 }
  0x88   : > { %5639 = vmatmul.mubr.bf16.gmra.mxu1 %v257_v36 }
  0x8b   : > { %471 = vmatmul.mubr.bf16.gmra.mxu0 %v256_v33 }
  0x8c   : > { %480 = vmatprep.mubr.bf16.mxu0 %v6242_v0 }
  0x93   : > { %481 = vmatmul.mubr.bf16.gmra.mxu0 %v257_v36 }
 0x13b   : > { %v452_v37 = vpop.f32.mrf.mxu0 }
 0x13d   : > { %v454_v38 = vpop.f32.mrf.mxu0 }
 0x13f   : > { %v456_v39 = vpop.f32.mrf.mxu0 }
 0x140   : > { %v6458_v57 = vpack.c.bf16 %v456_v39, %v452_v37  ;;  %v5636_v61 = vpop.f32.mrf.mxu1 }
 0x141   : > { %v458_v40 = vpop.f32.mrf.mxu0 }
 0x142   : > { %v6448_v56 = vpack.c.bf16 %v458_v40, %v454_v38  ;;  %v525_v62 = vpop.f32.mrf.mxu1  ;;  %v592_v17 = vshrl.u32 %v6458_v57, 16 }
 0x143   : > { %v462_v41 = vpop.f32.mrf.mxu0 }
 0x144   : > { %v5637_v5 = vpop.f32.mrf.mxu1  ;;  %v1670_v0 = vshrl.u32 %v6448_v56, 16 }
 0x145   : > { %v464_v42 = vpop.f32.mrf.mxu0  ;;  %v6513_v38 = vpack.c.bf16 %v5637_v5, %v5636_v61 }
 0x146   : > { %v528_v9 = vpop.f32.mrf.mxu1 }
 0x147   : > { %v466_v43 = vpop.f32.mrf.mxu0  ;;  %v6494_v12 = vpack.c.bf16 %v528_v9, %v525_v62  ;;  %7967 = vst [vmem:[#allocation13_spill] sm:$0xff] %v6513_v38 }
 0x148   : > { %v6464_v58 = vpack.c.bf16 %v466_v43, %v462_v41 }
 0x149   : > { %v468_v44 = vpop.f32.mrf.mxu0  ;;  %7966 = vst [vmem:[#allocation12_spill] sm:$0xff] %v6494_v12 }
 0x14a   : > { %v6442_v55 = vpack.c.bf16 %v468_v44, %v464_v42  ;;  %v614_v25 = vshrl.u32 %v6464_v58, 16 }
 0x14b   : > { %v472_v45 = vpop.f32.mrf.mxu0 }
 0x14c   : > { %v1686_v24 = vshrl.u32 %v6442_v55, 16 }
 0x14d   : > { %v474_v46 = vpop.f32.mrf.mxu0 }
 0x14f   : > { %v476_v47 = vpop.f32.mrf.mxu0 }
 0x150   : > { %v6474_v59 = vpack.c.bf16 %v476_v47, %v472_v45 }
 0x151   : > { %v478_v48 = vpop.f32.mrf.mxu0 }
 0x152   : > { %v6433_v54 = vpack.c.bf16 %v478_v48, %v474_v46 }
 0x153   : > { %v482_v49 = vpop.f32.mrf.mxu0 }
 0x154   : > { %v1702_v21 = vshrl.u32 %v6433_v54, 16 }
 0x155   : > { %v484_v50 = vpop.f32.mrf.mxu0 }
 0x157   : > { %v486_v51 = vpop.f32.mrf.mxu0 }
 0x158   : > { %v6480_v60 = vpack.c.bf16 %v486_v51, %v482_v49 }
 0x159   : > { %v488_v52 = vpop.f32.mrf.mxu0 }
 0x15a   : > { %v1637_v53 = vpack.c.bf16 %v488_v52, %v484_v50 }
 0x15c   : > { %1664 = vrot.lane.b32.xlu1 %v1637_v53, %s6243_s21  ;;  %1648 = vrot.lane.b32.xlu0 %v1637_v53, %s6244_s23  ;;  %v1718_v14 = vshrl.u32 %v1637_v53, 16 }
 0x160   : > { %1646 = vrot.lane.b32.xlu1 %v6433_v54, %s6244_s23  ;;  %1656 = vrot.lane.b32.xlu0 %v1637_v53, %s6245_s5 }
 0x164   : > { %1662 = vrot.lane.b32.xlu1 %v6433_v54, %s6243_s21  ;;  %1654 = vrot.lane.b32.xlu0 %v6433_v54, %s6245_s5 }
 0x168   : > { %1652 = vrot.lane.b32.xlu1 %v6442_v55, %s6245_s5  ;;  %1644 = vrot.lane.b32.xlu0 %v6442_v55, %s6244_s23 }
 0x16c   : > { %1642 = vrot.lane.b32.xlu1 %v6448_v56, %s6244_s23  ;;  %1660 = vrot.lane.b32.xlu0 %v6442_v55, %s6243_s21 }
 0x170   : > { %1658 = vrot.lane.b32.xlu1 %v6448_v56, %s6243_s21  ;;  %1650 = vrot.lane.b32.xlu0 %v6448_v56, %s6245_s5 }
 0x174   : > { %572 = vrot.lane.b32.xlu1 %v6458_v57, %s6245_s5  ;;  %564 = vrot.lane.b32.xlu0 %v6458_v57, %s6244_s23 }
 0x178   : > { %566 = vrot.lane.b32.xlu1 %v6464_v58, %s6244_s23  ;;  %580 = vrot.lane.b32.xlu0 %v6458_v57, %s6243_s21 }
 0x17c   : > { %582 = vrot.lane.b32.xlu1 %v6464_v58, %s6243_s21  ;;  %574 = vrot.lane.b32.xlu0 %v6464_v58, %s6245_s5 }
 0x180   : > { %576 = vrot.lane.b32.xlu1 %v6474_v59, %s6245_s5  ;;  %568 = vrot.lane.b32.xlu0 %v6474_v59, %s6244_s23 }
 0x184   : > { %570 = vrot.lane.b32.xlu1 %v6480_v60, %s6244_s23  ;;  %584 = vrot.lane.b32.xlu0 %v6474_v59, %s6243_s21 }
 0x188   : > { %586 = vrot.lane.b32.xlu1 %v6480_v60, %s6243_s21  ;;  %578 = vrot.lane.b32.xlu0 %v6480_v60, %s6245_s5 }
 0x1ce   : > { %v1665_v10 = vpop.permute.xlu1 %1664  ;;  %v1649_v11 = vpop.permute.xlu0 %1648 }
 0x1cf   : > { %v1716_v13 = vpack.i.b16 %v1649_v11, %v1637_v53  ;;  %v1719_v15 = vshrl.u32 %v1649_v11, 16  ;;  %v1727_v31 = vshrl.u32 %v1665_v10, 16 }
 0x1d1   : > { %v1720_v19 = vpack.i.b16 %v1719_v15, %v1718_v14  ;;  %v2126_v20 = vcombine.high %v1716_v13, %v6492_v6  ;;  %v2133_v35 = vrot.slane %v1716_v13, %v6497_v18 }
 0x1d2   : > { %v1647_v22 = vpop.permute.xlu1 %1646  ;;  %v1657_v23 = vpop.permute.xlu0 %1656 }
 0x1d3   : > { %v2192_v27 = vcombine.high %v1720_v19, %v6492_v6  ;;  %v1700_v28 = vpack.i.b16 %v1647_v22, %v6433_v54  ;;  %v1703_v32 = vshrl.u32 %v1647_v22, 16  ;;  %v1724_v33 = vpack.i.b16 %v1665_v10, %v1657_v23 }
 0x1d4   : > { %v1726_v34 = vshrl.u32 %v1657_v23, 16  ;;  %v2140_v36 = vrot.slane %v2126_v20, %v6497_v18  ;;  %v2199_v37 = vrot.slane %v1720_v19, %v6497_v18 }
 0x1d5   : > { %v1704_v39 = vpack.i.b16 %v1703_v32, %v1702_v21  ;;  %v2141_v41 = vcombine.high %v1724_v33, %v6492_v6  ;;  %v2148_v42 = vrot.slane %v1724_v33, %v6497_v18  ;;  %v2206_v45 = vrot.slane %v2192_v27, %v6497_v18 }
 0x1d6   : > { %v1728_v40 = vpack.i.b16 %v1727_v31, %v1726_v34  ;;  %v1663_v43 = vpop.permute.xlu1 %1662  ;;  %v1655_v44 = vpop.permute.xlu0 %1654  ;;  %v1994_v46 = vcombine.high %v1700_v28, %v6492_v6  ;;  %v2001_v49 = vrot.slane %v1700_v28, %v6497_v18 }
 0x1d7   : > { %v1711_v47 = vshrl.u32 %v1663_v43, 16  ;;  %v1710_v48 = vshrl.u32 %v1655_v44, 16  ;;  %v2155_v50 = vrot.slane %v2141_v41, %v6497_v18  ;;  %v2156_v51 = vcombine.low %v2133_v35, %v2148_v42 }
 0x1d8   : > { %v1708_v52 = vpack.i.b16 %v1663_v43, %v1655_v44  ;;  %v2060_v53 = vcombine.high %v1704_v39, %v6492_v6  ;;  %v2157_v54 = vcombine.high %v2133_v35, %v2148_v42  ;;  %v2207_v61 = vcombine.high %v1728_v40, %v6492_v6 }
 0x1d9   : > { %v2214_v62 = vrot.slane %v1728_v40, %v6497_v18  ;;  %v2164_v63 = vrot.slane %v2156_v51, %v6507_v29  ;;  %v2172_v1 = vcombine.low %v2140_v36, %v2155_v50  ;;  %v2173_v2 = vcombine.high %v2140_v36, %v2155_v50 }
 0x1da   : > { %v1712_v3 = vpack.i.b16 %v1711_v47, %v1710_v48  ;;  %v2171_v4 = vrot.slane %v2157_v54, %v6507_v29  ;;  %v2221_v5 = vrot.slane %v2207_v61, %v6497_v18  ;;  %v2009_v11 = vcombine.high %v1708_v52, %v6492_v6  ;;  %v6551_v33 = vpop.permute.xlu1 %1652 }
 0x1db   : > { %v2222_v7 = vcombine.low %v2199_v37, %v2214_v62  ;;  %v2223_v8 = vcombine.high %v2199_v37, %v2214_v62  ;;  %v6528_v9 = vrot.slane %v2172_v1, %v6507_v29  ;;  %v6531_v10 = vrot.slane %v2173_v2, %v6507_v29 }
 0x1dc   : > { %v2016_v13 = vrot.slane %v1708_v52, %v6497_v18  ;;  %v2238_v16 = vcombine.low %v2206_v45, %v2221_v5  ;;  %v2239_v19 = vcombine.high %v2206_v45, %v2221_v5  ;;  %v2008_v20 = vrot.slane %v1994_v46, %v6497_v18 }
 0x1dd   : > { %v6536_v14 = vrot.slane %v2222_v7, %v6507_v29  ;;  %v6539_v15 = vrot.slane %v2223_v8, %v6507_v29  ;;  %v2067_v21 = vrot.slane %v1704_v39, %v6497_v18  ;;  %v2074_v22 = vrot.slane %v2060_v53, %v6497_v18  ;;  %v1645_v39 = vpop.permute.xlu0 %1644 }
 0x1de   : > { %v2558_v23 = vcombine.low %v2164_v63, %v2171_v4  ;;  %v6545_v27 = vrot.slane %v2238_v16, %v6507_v29  ;;  %v5434_v28 = vcombine.high %v2164_v63, %v2171_v4  ;;  %v2574_v31 = vcombine.low %v6528_v9, %v6531_v10 }
 0x1df   : > { %v5435_v32 = vcombine.high %v6528_v9, %v6531_v10  ;;  %v6554_v34 = vrot.slane %v2239_v19, %v6507_v29  ;;  %v2608_v35 = vcombine.low %v6536_v14, %v6539_v15  ;;  %v2023_v36 = vrot.slane %v2009_v11, %v6497_v18 }
 0x1e0   : > { %v2024_v37 = vcombine.low %v2001_v49, %v2016_v13  ;;  %v6560_v40 = vrot.slane %v2558_v23, %v6497_v18  ;;  %v5436_v41 = vcombine.high %v6536_v14, %v6539_v15  ;;  %v2025_v42 = vcombine.high %v2001_v49, %v2016_v13 }
 0x1e1   : > { %v2075_v43 = vcombine.high %v1712_v3, %v6492_v6  ;;  %v2040_v45 = vcombine.low %v2008_v20, %v2023_v36  ;;  %v2041_v46 = vcombine.high %v2008_v20, %v2023_v36  ;;  %v2082_v47 = vrot.slane %v1712_v3, %v6497_v18  ;;  %v1643_v3 = vpop.permute.xlu1 %1642  ;;  %v1661_v11 = vpop.permute.xlu0 %1660 }
 0x1e2   : > { %v2032_v44 = vrot.slane %v2024_v37, %v6507_v29  ;;  %v6568_v48 = vrot.slane %v5434_v28, %v6497_v18  ;;  %v2039_v50 = vrot.slane %v2025_v42, %v6507_v29  ;;  %v1684_v52 = vpack.i.b16 %v1645_v39, %v6442_v55 }
 0x1e3   : > { %v2089_v51 = vrot.slane %v2075_v43, %v6497_v18  ;;  %v2048_v53 = vrot.slane %v2040_v45, %v6507_v29  ;;  %v2055_v49 = vrot.slane %v2041_v46, %v6507_v29  ;;  %v2090_v54 = vcombine.low %v2067_v21, %v2082_v47 }
 0x1e4   : > { %v2091_v61 = vcombine.high %v2067_v21, %v2082_v47  ;;  %v2458_v1 = vcombine.low %v2032_v44, %v2039_v50  ;;  %v5430_v2 = vcombine.high %v2032_v44, %v2039_v50  ;;  %v1694_v28 = vshrl.u32 %v6551_v33, 16 }
 0x1e5   : > { %v2106_v62 = vcombine.low %v2074_v22, %v2089_v51  ;;  %v2107_v63 = vcombine.high %v2074_v22, %v2089_v51  ;;  %v2098_v4 = vrot.slane %v2090_v54, %v6507_v29  ;;  %v2474_v7 = vcombine.low %v2048_v53, %v2055_v49 }
 0x1e6   : > { %v2105_v5 = vrot.slane %v2091_v61, %v6507_v29  ;;  %v5431_v8 = vcombine.high %v2048_v53, %v2055_v49  ;;  %v6588_v21 = vrot.slane %v2458_v1, %v6497_v18  ;;  %v6592_v36 = vrot.slane %v5430_v2, %v6497_v18  ;;  %v1659_v49 = vpop.permute.xlu1 %1658  ;;  %v1651_v1 = vpop.permute.xlu0 %1650 }
 0x1e7   : > { %v6582_v19 = vrot.slane %v2106_v62, %v6507_v29  ;;  %v6585_v20 = vrot.slane %v2107_v63, %v6507_v29  ;;  %v6595_v37 = vrot.slane %v2474_v7, %v6497_v18  ;;  %v1687_v42 = vshrl.u32 %v1645_v39, 16 }
 0x1e8   : > { %v2508_v22 = vcombine.low %v2098_v4, %v2105_v5  ;;  %v5432_v23 = vcombine.high %v2098_v4, %v2105_v5  ;;  %v1862_v43 = vcombine.high %v1684_v52, %v6492_v6  ;;  %v6599_v44 = vrot.slane %v5431_v8, %v6497_v18 }
 0x1e9   : > { %v1668_v47 = vpack.i.b16 %v1643_v3, %v6448_v56  ;;  %v1688_v51 = vpack.i.b16 %v1687_v42, %v1686_v24  ;;  %v1671_v39 = vshrl.u32 %v1643_v3, 16  ;;  %v1692_v53 = vpack.i.b16 %v1661_v11, %v6551_v33 }
 0x1ea   : > { %v6607_v50 = vrot.slane %v2508_v22, %v6497_v18  ;;  %v6613_v54 = vrot.slane %v5432_v23, %v6497_v18  ;;  %v1869_v61 = vrot.slane %v1684_v52, %v6497_v18  ;;  %v1876_v62 = vrot.slane %v1862_v43, %v6497_v18 }
 0x1eb   : > { %v1695_v63 = vshrl.u32 %v1661_v11, 16  ;;  %v1928_v2 = vcombine.high %v1688_v51, %v6492_v6  ;;  %v1672_v4 = vpack.i.b16 %v1671_v39, %v1670_v0  ;;  %v1730_v55 = vcombine.high %v1668_v47, %v6492_v6 }
 0x1ec   : > { %v1877_v24 = vcombine.high %v1692_v53, %v6492_v6  ;;  %v1737_v33 = vrot.slane %v1668_v47, %v6497_v18  ;;  %v1884_v5 = vrot.slane %v1692_v53, %v6497_v18  ;;  %v1679_v7 = vshrl.u32 %v1659_v49, 16 }
 0x1ed   : > { %v1696_v3 = vpack.i.b16 %v1695_v63, %v1694_v28  ;;  %v1935_v52 = vrot.slane %v1688_v51, %v6497_v18  ;;  %v1942_v8 = vrot.slane %v1928_v2, %v6497_v18  ;;  %v1676_v22 = vpack.i.b16 %v1659_v49, %v1651_v1 }
 0x1ee   : > { %v1891_v11 = vrot.slane %v1877_v24, %v6497_v18  ;;  %v1892_v23 = vcombine.low %v1869_v61, %v1884_v5  ;;  %v1893_v56 = vcombine.high %v1869_v61, %v1884_v5  ;;  %v1796_v43 = vcombine.high %v1672_v4, %v6492_v6 }
 0x1ef   : > { %v1943_v0 = vcombine.high %v1696_v3, %v6492_v6  ;;  %v1950_v42 = vrot.slane %v1696_v3, %v6497_v18  ;;  %v1678_v39 = vshrl.u32 %v1651_v1, 16 }
 0x1f0   : > { %v1908_v47 = vcombine.low %v1876_v62, %v1891_v11  ;;  %v1909_v28 = vcombine.high %v1876_v62, %v1891_v11  ;;  %v1900_v53 = vrot.slane %v1892_v23, %v6507_v29  ;;  %v1907_v51 = vrot.slane %v1893_v56, %v6507_v29 }
 0x1f1   : > { %v1957_v63 = vrot.slane %v1943_v0, %v6497_v18  ;;  %v1958_v2 = vcombine.low %v1935_v52, %v1950_v42  ;;  %v1959_v24 = vcombine.high %v1935_v52, %v1950_v42  ;;  %v1680_v5 = vpack.i.b16 %v1679_v7, %v1678_v39 }
 0x1f2   : > { %v1916_v49 = vrot.slane %v1908_v47, %v6507_v29  ;;  %v1923_v61 = vrot.slane %v1909_v28, %v6507_v29  ;;  %v2358_v46 = vcombine.low %v1900_v53, %v1907_v51  ;;  %v5426_v1 = vcombine.high %v1900_v53, %v1907_v51  ;;  %v565_v51 = vpop.permute.xlu0 %564 }
 0x1f3   : > { %v1966_v3 = vrot.slane %v1958_v2, %v6507_v29  ;;  %v1974_v30 = vcombine.low %v1942_v8, %v1957_v63  ;;  %v1975_v26 = vcombine.high %v1942_v8, %v1957_v63  ;;  %v1973_v62 = vrot.slane %v1959_v24, %v6507_v29 }
 0x1f4   : > { %v2374_v11 = vcombine.low %v1916_v49, %v1923_v61  ;;  %v5427_v23 = vcombine.high %v1916_v49, %v1923_v61  ;;  %v1744_v56 = vrot.slane %v1730_v55, %v6497_v18  ;;  %v1745_v7 = vcombine.high %v1676_v22, %v6492_v6 }
 0x1f5   : > { %v6639_v0 = vrot.slane %v1974_v30, %v6507_v29  ;;  %v6642_v47 = vrot.slane %v1975_v26, %v6507_v29  ;;  %v1803_v52 = vrot.slane %v1672_v4, %v6497_v18  ;;  %v1810_v8 = vrot.slane %v1796_v43, %v6497_v18 }
 0x1f6   : > { %v6648_v42 = vrot.slane %v2358_v46, %v6497_v18  ;;  %v6651_v28 = vrot.slane %v5426_v1, %v6497_v18  ;;  %v6654_v55 = vrot.slane %v2374_v11, %v6497_v18  ;;  %v6657_v30 = vrot.slane %v5427_v23, %v6497_v18 }
 0x1f7   : > { %v2408_v26 = vcombine.low %v1966_v3, %v1973_v62  ;;  %v1752_v39 = vrot.slane %v1676_v22, %v6497_v18  ;;  %v5428_v53 = vcombine.high %v1966_v3, %v1973_v62  ;;  %v1759_v4 = vrot.slane %v1745_v7, %v6497_v18  ;;  %v573_v62 = vpop.permute.xlu1 %572 }
 0x1f8   : > { %v1811_v43 = vcombine.high %v1680_v5, %v6492_v6  ;;  %v1818_v46 = vrot.slane %v1680_v5, %v6497_v18  ;;  %v590_v7 = vpack.i.b16 %v565_v51, %v6458_v57 }
 0x1f9   : > { %v1760_v49 = vcombine.low %v1737_v33, %v1752_v39  ;;  %v1761_v61 = vcombine.high %v1737_v33, %v1752_v39  ;;  %v1776_v24 = vcombine.low %v1744_v56, %v1759_v4  ;;  %v1777_v1 = vcombine.high %v1744_v56, %v1759_v4 }
 0x1fa   : > { %v1825_v22 = vrot.slane %v1811_v43, %v6497_v18  ;;  %v1826_v3 = vcombine.low %v1803_v52, %v1818_v46  ;;  %v1827_v5 = vcombine.high %v1803_v52, %v1818_v46  ;;  %v593_v52 = vshrl.u32 %v565_v51, 16  ;;  %v581_v51 = vpop.permute.xlu0 %580 }
 0x1fb   : > { %v1768_v11 = vrot.slane %v1760_v49, %v6507_v29  ;;  %v1775_v23 = vrot.slane %v1761_v61, %v6507_v29  ;;  %v1784_v63 = vrot.slane %v1776_v24, %v6507_v29  ;;  %v1791_v45 = vrot.slane %v1777_v1, %v6507_v29 }
 0x1fc   : > { %v1834_v2 = vrot.slane %v1826_v3, %v6507_v29  ;;  %v1842_v33 = vcombine.low %v1810_v8, %v1825_v22  ;;  %v1841_v56 = vrot.slane %v1827_v5, %v6507_v29  ;;  %v1843_v39 = vcombine.high %v1810_v8, %v1825_v22 }
 0x1fd   : > { %v2258_v4 = vcombine.low %v1768_v11, %v1775_v23  ;;  %v5422_v43 = vcombine.high %v1768_v11, %v1775_v23  ;;  %v2274_v49 = vcombine.low %v1784_v63, %v1791_v45  ;;  %v5423_v61 = vcombine.high %v1784_v63, %v1791_v45  ;;  %v567_v45 = vpop.permute.xlu1 %566 }
 0x1fe   : > { %v6676_v16 = vrot.slane %v1842_v33, %v6507_v29  ;;  %v6679_v46 = vrot.slane %v2408_v26, %v6497_v18  ;;  %v6682_v24 = vrot.slane %v5428_v53, %v6497_v18  ;;  %v6685_v1 = vrot.slane %v1843_v39, %v6507_v29 }
 0x1ff   : > { %v2308_v3 = vcombine.low %v1834_v2, %v1841_v56  ;;  %v6688_v8 = vrot.slane %v2258_v4, %v6497_v18  ;;  %v5424_v22 = vcombine.high %v1834_v2, %v1841_v56  ;;  %v600_v11 = vshrl.u32 %v573_v62, 16 }
 0x200   : > { %v594_v23 = vpack.i.b16 %v593_v52, %v592_v17  ;;  %v6693_v26 = vrot.slane %v5422_v43, %v6497_v18  ;;  %v6696_v53 = vrot.slane %v2274_v49, %v6497_v18  ;;  %v6699_v63 = vrot.slane %v5423_v61, %v6497_v18 }
 0x201   : > { %v658_v5 = vcombine.high %v590_v7, %v6492_v6  ;;  %v6703_v33 = vrot.slane %v2308_v3, %v6497_v18  ;;  %v6711_v56 = vrot.slane %v5424_v22, %v6497_v18  ;;  %v612_v39 = vpack.i.b16 %v567_v45, %v6464_v58 }
 0x202   : > { %v724_v2 = vcombine.high %v594_v23, %v6492_v6  ;;  %v615_v4 = vshrl.u32 %v567_v45, 16  ;;  %v598_v43 = vpack.i.b16 %v581_v51, %v573_v62  ;;  %v665_v49 = vrot.slane %v590_v7, %v6497_v18 }
 0x203   : > { %v601_v61 = vshrl.u32 %v581_v51, 16  ;;  %v2581_v52 = vrot.slane %v2574_v31, %v6497_v18  ;;  %v2589_v3 = vrot.slane %v5435_v32, %v6497_v18  ;;  %v672_v22 = vrot.slane %v658_v5, %v6497_v18 }
 0x204   : > { %v731_v17 = vrot.slane %v594_v23, %v6497_v18  ;;  %v616_v62 = vpack.i.b16 %v615_v4, %v614_v25  ;;  %v673_v7 = vcombine.high %v598_v43, %v6492_v6  ;;  %v738_v45 = vrot.slane %v724_v2, %v6497_v18 }
 0x205   : > { %v602_v51 = vpack.i.b16 %v601_v61, %v600_v11  ;;  %v680_v57 = vrot.slane %v598_v43, %v6497_v18  ;;  %v2590_v31 = vcombine.low %v6560_v40, %v6568_v48  ;;  %v790_v9 = vcombine.high %v612_v39, %v6492_v6 }
 0x206   : > { %v6734_v10 = vrot.slane %v612_v39, %v6497_v18  ;;  %v687_v32 = vrot.slane %v673_v7, %v6497_v18  ;;  %v2598_v23 = vcombine.low %v2581_v52, %v2589_v3  ;;  %v856_v11 = vcombine.high %v616_v62, %v6492_v6 }
 0x207   : > { %v688_v58 = vcombine.low %v665_v49, %v680_v57  ;;  %v689_v25 = vcombine.high %v665_v49, %v680_v57  ;;  %v739_v5 = vcombine.high %v602_v51, %v6492_v6  ;;  %v746_v2 = vrot.slane %v602_v51, %v6497_v18 }
 0x208   : > { %v704_v4 = vcombine.low %v672_v22, %v687_v32  ;;  %v705_v43 = vcombine.high %v672_v22, %v687_v32  ;;  %v6741_v40 = vrot.slane %v2590_v31, %v6507_v29  ;;  %v6749_v7 = vrot.slane %v2598_v23, %v6507_v29 }
 0x209   : > { %v696_v48 = vrot.slane %v688_v58, %v6507_v29  ;;  %v703_v39 = vrot.slane %v689_v25, %v6507_v29  ;;  %v753_v61 = vrot.slane %v739_v5, %v6497_v18  ;;  %v754_v52 = vcombine.low %v731_v17, %v746_v2 }
 0x20a   : > { %v712_v57 = vrot.slane %v704_v4, %v6507_v29  ;;  %v719_v49 = vrot.slane %v705_v43, %v6507_v29  ;;  %v755_v3 = vcombine.high %v731_v17, %v746_v2  ;;  %v804_v4 = vrot.slane %v790_v9, %v6497_v18 }
 0x20b   : > { %v6752_v22 = vrot.slane %v754_v52, %v6507_v29  ;;  %v770_v51 = vcombine.low %v738_v45, %v753_v61  ;;  %v771_v31 = vcombine.high %v738_v45, %v753_v61  ;;  %v1186_v32 = vcombine.low %v696_v48, %v703_v39 }
 0x20c   : > { %v6755_v58 = vrot.slane %v755_v3, %v6507_v29  ;;  %v5406_v25 = vcombine.high %v696_v48, %v703_v39  ;;  %v1202_v5 = vcombine.low %v712_v57, %v719_v49  ;;  %v5407_v13 = vcombine.high %v712_v57, %v719_v49  ;;  %v583_v39 = vpop.permute.xlu1 %582 }
 0x20d   : > { %v863_v43 = vrot.slane %v616_v62, %v6497_v18  ;;  %v6760_v17 = vrot.slane %v770_v51, %v6507_v29  ;;  %v6763_v23 = vrot.slane %v771_v31, %v6507_v29  ;;  %v6766_v2 = vrot.slane %v856_v11, %v6497_v18  ;;  %v575_v62 = vpop.permute.xlu0 %574 }
 0x20e   : > { %v6769_v45 = vrot.slane %v1186_v32, %v6497_v18  ;;  %v6772_v48 = vrot.slane %v5406_v25, %v6497_v18  ;;  %v2606_v9 = vcombine.low %v6741_v40, %v6749_v7  ;;  %v6777_v61 = vrot.slane %v1202_v5, %v6497_v18 }
 0x20f   : > { %v6780_v52 = vrot.slane %v5407_v13, %v6497_v18  ;;  %v2615_v57 = vrot.slane %v2608_v35, %v6497_v18  ;;  %v2623_v3 = vrot.slane %v5436_v41, %v6497_v18  ;;  %v7968_v13 = vcombine.low %v6545_v27, %v6554_v34 }
 0x210   : > { %v7969_v31 = vcombine.high %v6545_v27, %v6554_v34  ;;  %v623_v5 = vshrl.u32 %v583_v39, 16  ;;  %v620_v49 = vpack.i.b16 %v583_v39, %v575_v62  ;;  %v2697_v41 = vshrl.u32 %v2606_v9, 16 }
 0x211   : > { %v2631_v51 = vrot.slane %v7968_v13, %v6497_v18  ;;  %v2640_v14 = vcombine.low %v2615_v57, %v2623_v3  ;;  %v622_v11 = vshrl.u32 %v575_v62, 16  ;;  %v2490_v27 = vcombine.low %v6588_v21, %v6592_v36 }
 0x212   : > { %v2639_v32 = vrot.slane %v7969_v31, %v6497_v18  ;;  %v805_v12 = vcombine.high %v620_v49, %v6492_v6  ;;  %v812_v13 = vrot.slane %v620_v49, %v6497_v18  ;;  %v2498_v34 = vcombine.low %v6595_v37, %v6599_v44 }
 0x213   : > { %v6813_v31 = vrot.slane %v2640_v14, %v6507_v29  ;;  %v624_v39 = vpack.i.b16 %v623_v5, %v622_v11  ;;  %v7971_v62 = vcombine.low %v6582_v19, %v6585_v20 }
 0x214   : > { %v2648_v15 = vcombine.low %v2631_v51, %v2639_v32  ;;  %v819_v49 = vrot.slane %v805_v12, %v6497_v18  ;;  %v820_v21 = vcombine.low %v6734_v10, %v812_v13  ;;  %v821_v36 = vcombine.high %v6734_v10, %v812_v13 }
 0x215   : > { %7970 = vst [vmem:[#allocation14_spill] sm:$0xff] %v6813_v31  ;;  %v6822_v57 = vrot.slane %v7971_v62, %v6497_v18  ;;  %v6828_v37 = vrot.slane %v2498_v34, %v6507_v29  ;;  %v871_v11 = vcombine.high %v624_v39, %v6492_v6  ;;  %v878_v3 = vrot.slane %v624_v39, %v6497_v18 }
 0x216   : > { %v6816_v25 = vrot.slane %v2648_v15, %v6507_v29  ;;  %v7972_v51 = vcombine.high %v6582_v19, %v6585_v20  ;;  %v828_v12 = vrot.slane %v820_v21, %v6507_v29  ;;  %v835_v5 = vrot.slane %v821_v36, %v6507_v29 }
 0x217   : > { %v836_v10 = vcombine.low %v804_v4, %v819_v49  ;;  %v837_v14 = vcombine.high %v804_v4, %v819_v49  ;;  %v885_v34 = vrot.slane %v871_v11, %v6497_v18  ;;  %v886_v62 = vcombine.low %v863_v43, %v878_v3 }
 0x218   : > { %v2656_v44 = vcombine.low %v6813_v31, %v6816_v25  ;;  %v2539_v32 = vrot.slane %v7972_v51, %v6497_v18  ;;  %v887_v38 = vcombine.high %v863_v43, %v878_v3  ;;  %v1286_v31 = vcombine.low %v828_v12, %v835_v5 }
 0x219   : > { %v844_v35 = vrot.slane %v836_v10, %v6507_v29  ;;  %v851_v39 = vrot.slane %v837_v14, %v6507_v29  ;;  %v894_v21 = vrot.slane %v886_v62, %v6507_v29  ;;  %v902_v4 = vcombine.low %v6766_v2, %v885_v34 }
 0x21a   : > { %v2696_v15 = vpack.i.b16 %v2656_v44, %v2606_v9  ;;  %v2698_v13 = vshrl.u32 %v2656_v44, 16  ;;  %v6847_v9 = vpop.permute.xlu1 %576  ;;  %v901_v49 = vrot.slane %v887_v38, %v6507_v29  ;;  %v903_v36 = vcombine.high %v6766_v2, %v885_v34 }
 0x21b   : > { %v1293_v44 = vrot.slane %v1286_v31, %v6497_v18  ;;  %v5410_v43 = vcombine.high %v828_v12, %v835_v5  ;;  %v910_v11 = vrot.slane %v902_v4, %v6507_v29  ;;  %v1302_v3 = vcombine.low %v844_v35, %v851_v39  ;;  %v569_v4 = vpop.permute.xlu0 %568 }
 0x21c   : > { %5818 = vmatprep.subr.msk.bf16.mxu0 %vm3794_vm0, %v2696_v15  ;;  %v3817_v19 = vsel %vm3794_vm0, %v2696_v15, 0  ;;  %v2699_v20 = vpack.i.b16 %v2698_v13, %v2697_v41  ;;  %v5411_v41 = vcombine.high %v844_v35, %v851_v39  ;;  %v917_v10 = vrot.slane %v903_v36, %v6507_v29 }
 0x21d   : > { %5643 = vmatpush3.bf16.xpose.msra.mxu0 %v3817_v19  ;;  %v1301_v14 = vrot.slane %v5410_v43, %v6497_v18  ;;  %v1336_v15 = vcombine.low %v894_v21, %v901_v49  ;;  %v5412_v13 = vcombine.high %v894_v21, %v901_v49  ;;  %v1309_v38 = vrot.slane %v1302_v3, %v6497_v18 }
 0x21e   : > { %5822 = vmatprep.subr.msk.bf16.mxu1 %vm3794_vm0, %v2699_v20  ;;  %v3906_v51 = vsel %vm3794_vm0, %v2699_v20, 0  ;;  %v1317_v2 = vrot.slane %v5411_v41, %v6497_v18  ;;  %v6860_v31 = vrot.slane %v2490_v27, %v6507_v29  ;;  %v2540_v12 = vcombine.low %v6607_v50, %v6613_v54  ;;  %v571_v49 = vpop.permute.xlu1 %570 }
 0x21f   : > { %5659 = vmatpush3.bf16.xpose.msra.mxu1 %v3906_v51  ;;  %v1318_v35 = vcombine.low %v1293_v44, %v1301_v14  ;;  %v1343_v5 = vrot.slane %v1336_v15, %v6497_v18  ;;  %v1351_v34 = vrot.slane %v5412_v13, %v6497_v18  ;;  %v1352_v62 = vcombine.low %v910_v11, %v917_v10 }
 0x220   : > { %v1326_v39 = vcombine.low %v1309_v38, %v1317_v2  ;;  %v5413_v19 = vcombine.high %v910_v11, %v917_v10  ;;  %v2506_v20 = vcombine.low %v6860_v31, %v6828_v37  ;;  %v2548_v21 = vcombine.low %v6822_v57, %v2539_v32 }
 0x221   : > { %v7973_v27 = vcombine.low %v6752_v22, %v6755_v58  ;;  %v7974_v54 = vcombine.high %v6752_v22, %v6755_v58  ;;  %v1359_v44 = vrot.slane %v1352_v62, %v6497_v18  ;;  %v1368_v43 = vcombine.low %v1343_v5, %v1351_v34 }
 0x222   : > { %v6883_v11 = vrot.slane %v1326_v39, %v6507_v29  ;;  %v1367_v57 = vrot.slane %v5413_v19, %v6497_v18  ;;  %v6887_v32 = vrot.slane %v2540_v12, %v6507_v29  ;;  %v6890_v3 = vrot.slane %v2548_v21, %v6507_v29  ;;  %v585_v21 = vpop.permute.xlu0 %584 }
 0x223   : > { %v6873_v50 = vrot.slane %v7973_v27, %v6497_v18  ;;  %v6879_v36 = vrot.slane %v7974_v54, %v6497_v18  ;;  %v6893_v41 = vrot.slane %v1318_v35, %v6507_v29  ;;  %v628_v22 = vpack.i.b16 %v569_v4, %v6474_v59 }
 0x224   : > { %v631_v58 = vshrl.u32 %v569_v4, 16  ;;  %v644_v51 = vpack.i.b16 %v571_v49, %v6480_v60  ;;  %v1376_v10 = vcombine.low %v1359_v44, %v1367_v57  ;;  %v2556_v14 = vcombine.low %v6887_v32, %v6890_v3 }
 0x225   : > { %v2685_v15 = vshrl.u32 %v2506_v20, 16  ;;  %v638_v13 = vshrl.u32 %v6847_v9, 16  ;;  %v6901_v38 = vrot.slane %v1368_v43, %v6507_v29  ;;  %v7975_v2 = vshrl.u32 %v6474_v59, 16 }
 0x226   : > { %v922_v35 = vcombine.high %v628_v22, %v6492_v6  ;;  %v647_v5 = vshrl.u32 %v571_v49, 16  ;;  %v6908_v34 = vcombine.low %v6893_v41, %v6883_v11  ;;  %v2684_v62 = vpack.i.b16 %v2556_v14, %v2506_v20 }
 0x227   : > { %v632_v12 = vpack.i.b16 %v631_v58, %v7975_v2  ;;  %v2686_v39 = vshrl.u32 %v2556_v14, 16  ;;  %v1054_v19 = vcombine.high %v644_v51, %v6492_v6  ;;  %v6912_v4 = vrot.slane %v1376_v10, %v6507_v29 }
 0x228   : > { %v929_v27 = vrot.slane %v628_v22, %v6497_v18  ;;  %v7976_v54 = vshrl.u32 %v6480_v60, 16  ;;  %5819 = vmatprep.subr.msk.bf16.mxu0 %vm3794_vm0, %v2684_v62  ;;  %v936_v43 = vrot.slane %v922_v35, %v6497_v18  ;;  %v3814_v57 = vsel %vm3794_vm0, %v2684_v62, 0 }
 0x229   : > { %v988_v59 = vcombine.high %v632_v12, %v6492_v6  ;;  %v2687_v49 = vpack.i.b16 %v2686_v39, %v2685_v15  ;;  %v995_v20 = vrot.slane %v632_v12, %v6497_v18  ;;  %5645 = vmatpush3.bf16.xpose.msra.mxu0 %v3814_v57  ;;  %v6924_v10 = vrot.slane %v644_v51, %v6497_v18 }
 0x22a   : > { %v648_v44 = vpack.i.b16 %v647_v5, %v7976_v54  ;;  %v6927_v22 = vrot.slane %v1054_v19, %v6497_v18  ;;  %v636_v60 = vpack.i.b16 %v585_v21, %v6847_v9  ;;  %v639_v14 = vshrl.u32 %v585_v21, 16 }
 0x22b   : > { %v1002_v58 = vrot.slane %v988_v59, %v6497_v18  ;;  %5823 = vmatprep.subr.msk.bf16.mxu1 %vm3794_vm0, %v2687_v49  ;;  %v3903_v15 = vsel %vm3794_vm0, %v2687_v49, 0  ;;  %v2390_v2 = vcombine.low %v6648_v42, %v6651_v28  ;;  %v2398_v12 = vcombine.low %v6654_v55, %v6657_v30 }
 0x22c   : > { %v1120_v35 = vcombine.high %v648_v44, %v6492_v6  ;;  %v937_v51 = vcombine.high %v636_v60, %v6492_v6  ;;  %v944_v5 = vrot.slane %v636_v60, %v6497_v18  ;;  %5661 = vmatpush3.bf16.xpose.msra.mxu1 %v3903_v15  ;;  %v7977_v9 = vcombine.low %v6639_v0, %v6642_v47 }
 0x22d   : > { %v640_v39 = vpack.i.b16 %v639_v14, %v638_v13  ;;  %v6944_v19 = vrot.slane %v2390_v2, %v6507_v29  ;;  %v6947_v42 = vrot.slane %v2398_v12, %v6507_v29  ;;  %v7978_v28 = vcombine.high %v6639_v0, %v6642_v47 }
 0x22e   : > { %v2431_v62 = vrot.slane %v7977_v9, %v6497_v18  ;;  %v6954_v30 = vrot.slane %v648_v44, %v6497_v18  ;;  %v951_v21 = vrot.slane %v937_v51, %v6497_v18  ;;  %v952_v59 = vcombine.low %v929_v27, %v944_v5 }
 0x22f   : > { %v2439_v55 = vrot.slane %v7978_v28, %v6497_v18  ;;  %v953_v54 = vcombine.high %v929_v27, %v944_v5  ;;  %v1003_v13 = vcombine.high %v640_v39, %v6492_v6  ;;  %v1010_v49 = vrot.slane %v640_v39, %v6497_v18 }
 0x230   : > { %v2406_v57 = vcombine.low %v6944_v19, %v6947_v42  ;;  %v2440_v60 = vcombine.low %v6679_v46, %v6682_v24  ;;  %v960_v0 = vrot.slane %v952_v59, %v6507_v29  ;;  %v968_v44 = vcombine.low %v936_v43, %v951_v21 }
 0x231   : > { %v967_v47 = vrot.slane %v953_v54, %v6507_v29  ;;  %v969_v14 = vcombine.high %v936_v43, %v951_v21  ;;  %v1017_v15 = vrot.slane %v1003_v13, %v6497_v18  ;;  %v1018_v2 = vcombine.low %v995_v20, %v1010_v49 }
 0x232   : > { %v1019_v27 = vcombine.high %v995_v20, %v1010_v49  ;;  %v2448_v12 = vcombine.low %v2431_v62, %v2439_v55  ;;  %v976_v51 = vrot.slane %v968_v44, %v6507_v29  ;;  %v6971_v54 = vrot.slane %v1120_v35, %v6497_v18 }
 0x233   : > { %v983_v5 = vrot.slane %v969_v14, %v6507_v29  ;;  %v1386_v9 = vcombine.low %v960_v0, %v967_v47  ;;  %v5414_v39 = vcombine.high %v960_v0, %v967_v47  ;;  %v1026_v28 = vrot.slane %v1018_v2, %v6507_v29  ;;  %v587_v0 = vpop.permute.xlu1 %586  ;;  %v579_v47 = vpop.permute.xlu0 %578 }
 0x234   : > { %v1033_v46 = vrot.slane %v1019_v27, %v6507_v29  ;;  %v1034_v24 = vcombine.low %v1002_v58, %v1017_v15  ;;  %v1035_v59 = vcombine.high %v1002_v58, %v1017_v15  ;;  %v6974_v20 = vrot.slane %v2440_v60, %v6507_v29 }
 0x235   : > { %v1402_v43 = vcombine.low %v976_v51, %v983_v5  ;;  %v5415_v21 = vcombine.high %v976_v51, %v983_v5  ;;  %v6983_v58 = vrot.slane %v1386_v9, %v6497_v18  ;;  %v6986_v35 = vrot.slane %v5414_v39, %v6497_v18 }
 0x236   : > { %v6977_v62 = vrot.slane %v1034_v24, %v6507_v29  ;;  %v6980_v55 = vrot.slane %v1035_v59, %v6507_v29  ;;  %v1436_v13 = vcombine.low %v1026_v28, %v1033_v46  ;;  %v5416_v49 = vcombine.high %v1026_v28, %v1033_v46 }
 0x237   : > { %v6989_v44 = vrot.slane %v1402_v43, %v6497_v18  ;;  %v6992_v60 = vrot.slane %v2448_v12, %v6507_v29  ;;  %v6995_v14 = vrot.slane %v5415_v21, %v6497_v18  ;;  %v2673_v27 = vshrl.u32 %v2406_v57, 16 }
 0x238   : > { %v6998_v15 = vrot.slane %v1436_v13, %v6497_v18  ;;  %v7001_v2 = vrot.slane %v5416_v49, %v6497_v18  ;;  %v655_v5 = vshrl.u32 %v587_v0, 16  ;;  %v652_v9 = vpack.i.b16 %v587_v0, %v579_v47 }
 0x239   : > { %v2456_v51 = vcombine.low %v6974_v20, %v6992_v60  ;;  %v654_v39 = vshrl.u32 %v579_v47, 16  ;;  %v2290_v28 = vcombine.low %v6688_v8, %v6693_v26  ;;  %v2298_v46 = vcombine.low %v6696_v53, %v6699_v63 }
 0x23a   : > { %v7979_v24 = vcombine.low %v6676_v16, %v6685_v1  ;;  %v1069_v49 = vcombine.high %v652_v9, %v6492_v6  ;;  %v1076_v0 = vrot.slane %v652_v9, %v6497_v18  ;;  %v7980_v26 = vcombine.high %v6676_v16, %v6685_v1 }
 0x23b   : > { %v2672_v43 = vpack.i.b16 %v2456_v51, %v2406_v57  ;;  %v2674_v21 = vshrl.u32 %v2456_v51, 16  ;;  %v656_v13 = vpack.i.b16 %v655_v5, %v654_v39  ;;  %v7018_v47 = vrot.slane %v2290_v28, %v6507_v29 }
 0x23c   : > { %v2331_v59 = vrot.slane %v7979_v24, %v6497_v18  ;;  %v7021_v8 = vrot.slane %v2298_v46, %v6507_v29  ;;  %v2339_v53 = vrot.slane %v7980_v26, %v6497_v18  ;;  %v1083_v57 = vrot.slane %v1069_v49, %v6497_v18 }
 0x23d   : > { %5820 = vmatprep.subr.msk.bf16.mxu0 %vm3794_vm0, %v2672_v43  ;;  %v2675_v63 = vpack.i.b16 %v2674_v21, %v2673_v27  ;;  %v1135_v51 = vcombine.high %v656_v13, %v6492_v6  ;;  %v1142_v5 = vrot.slane %v656_v13, %v6497_v18  ;;  %v1084_v9 = vcombine.low %v6924_v10, %v1076_v0 }
 0x23e   : > { %v1085_v39 = vcombine.high %v6924_v10, %v1076_v0  ;;  %v3811_v28 = vsel %vm3794_vm0, %v2672_v43, 0  ;;  %v2340_v46 = vcombine.low %v6703_v33, %v6711_v56  ;;  %v1100_v16 = vcombine.low %v6927_v22, %v1083_v57  ;;  %v5640_v56 = vpop.f32.mrf.mxu1 }
 0x23f   : > { %5824 = vmatprep.subr.msk.bf16.mxu1 %vm3794_vm0, %v2675_v63  ;;  %v1101_v1 = vcombine.high %v6927_v22, %v1083_v57  ;;  %v1149_v27 = vrot.slane %v1135_v51, %v6497_v18  ;;  %v1150_v24 = vcombine.low %v6954_v30, %v1142_v5  ;;  %v1092_v21 = vrot.slane %v1084_v9, %v6507_v29 }
 0x240   : > { %v1099_v13 = vrot.slane %v1085_v39, %v6507_v29  ;;  %v1151_v10 = vcombine.high %v6954_v30, %v1142_v5  ;;  %5647 = vmatpush3.bf16.xpose.msra.mxu0 %v3811_v28  ;;  %v2306_v33 = vcombine.low %v7018_v47, %v7021_v8  ;;  %v1108_v43 = vrot.slane %v1100_v16, %v6507_v29 }
 0x241   : > { %v1115_v49 = vrot.slane %v1101_v1, %v6507_v29  ;;  %v1158_v22 = vrot.slane %v1150_v24, %v6507_v29  ;;  %v1166_v0 = vcombine.low %v6971_v54, %v1149_v27  ;;  %v1167_v57 = vcombine.high %v6971_v54, %v1149_v27 }
 0x242   : > { %v1165_v26 = vrot.slane %v1151_v10, %v6507_v29  ;;  %v1486_v51 = vcombine.low %v1092_v21, %v1099_v13  ;;  %v5418_v9 = vcombine.high %v1092_v21, %v1099_v13  ;;  %v2348_v28 = vcombine.low %v2331_v59, %v2339_v53  ;;  %v541_v10 = vpop.f32.mrf.mxu1 }
 0x243   : > { %v7053_v30 = vrot.slane %v1166_v0, %v6507_v29  ;;  %v1502_v5 = vcombine.low %v1108_v43, %v1115_v49  ;;  %v5419_v39 = vcombine.high %v1108_v43, %v1115_v49  ;;  %v5417_v16 = vcombine.high %v6977_v62, %v6980_v55 }
 0x244   : > { %v7058_v1 = vrot.slane %v1167_v57, %v6507_v29  ;;  %v1536_v24 = vcombine.low %v1158_v22, %v1165_v26  ;;  %v7061_v12 = vrot.slane %v2340_v46, %v6507_v29  ;;  %v7064_v54 = vrot.slane %v1486_v51, %v6497_v18 }
 0x245   : > { %v7067_v27 = vrot.slane %v5418_v9, %v6497_v18  ;;  %v7070_v21 = vrot.slane %v1502_v5, %v6497_v18  ;;  %v7073_v59 = vrot.slane %v2348_v28, %v6507_v29  ;;  %v7076_v53 = vrot.slane %v5419_v39, %v6497_v18  ;;  %v5641_v28 = vpop.f32.mrf.mxu1 }
 0x246   : > { %v7079_v13 = vrot.slane %v1536_v24, %v6497_v18  ;;  %v5420_v46 = vcombine.high %v1158_v22, %v1165_v26  ;;  %v3900_v43 = vsel %vm3794_vm0, %v2675_v63, 0  ;;  %v1552_v49 = vcombine.low %v7053_v30, %v7058_v1 }
 0x247   : > { %v2356_v0 = vcombine.low %v7061_v12, %v7073_v59  ;;  %5663 = vmatpush3.bf16.xpose.msra.mxu1 %v3900_v43  ;;  %v2661_v57 = vshrl.u32 %v2306_v33, 16  ;;  %v1218_v51 = vcombine.low %v6769_v45, %v6772_v48  ;;  %v1226_v9 = vcombine.low %v6777_v61, %v6780_v52 }
 0x248   : > { %v7981_v22 = vcombine.low %v6760_v17, %v6763_v23  ;;  %v7982_v63 = vcombine.high %v6760_v17, %v6763_v23  ;;  %v1268_v39 = vcombine.low %v6873_v50, %v6879_v36  ;;  %v2607_v48 = vcombine.high %v6741_v40, %v6749_v7  ;;  %v7983_v23 = vld [vmem:[#allocation14_spill] sm:$0xff] }
 0x249   : > { %v2660_v24 = vpack.i.b16 %v2356_v0, %v2306_v33  ;;  %v2662_v43 = vshrl.u32 %v2356_v0, 16  ;;  %v7101_v45 = vrot.slane %v1218_v51, %v6507_v29  ;;  %v7106_v61 = vrot.slane %v1226_v9, %v6507_v29 }
 0x24a   : > { %v1259_v26 = vrot.slane %v7981_v22, %v6497_v18  ;;  %v1267_v5 = vrot.slane %v7982_v63, %v6497_v18  ;;  %v7109_v52 = vrot.slane %v1268_v39, %v6507_v29  ;;  %v2657_v22 = vcombine.high %v7983_v23, %v6816_v25 }
 0x24b   : > { %5821 = vmatprep.subr.msk.bf16.mxu0 %vm3794_vm0, %v2660_v24  ;;  %v2663_v50 = vpack.i.b16 %v2662_v43, %v2661_v57  ;;  %v3808_v36 = vsel %vm3794_vm0, %v2660_v24, 0  ;;  %v7115_v33 = vpack.c.bf16 %v5641_v28, %v5640_v56  ;;  %v2703_v0 = vshrl.u32 %v2607_v48, 16 }
 0x24c   : > { %v1276_v17 = vcombine.low %v1259_v26, %v1267_v5  ;;  %v1234_v40 = vcombine.low %v7101_v45, %v7106_v61  ;;  %5649 = vmatpush3.bf16.xpose.msra.mxu0 %v3808_v36  ;;  %v2702_v51 = vpack.i.b16 %v2657_v22, %v2607_v48  ;;  %v2704_v9 = vshrl.u32 %v2657_v22, 16  ;;  %v544_v26 = vpop.f32.mrf.mxu1 }
 0x24d   : > { %v7123_v25 = vrot.slane %v5420_v46, %v6497_v18  ;;  %v5421_v57 = vcombine.high %v7053_v30, %v7058_v1  ;;  %5825 = vmatprep.subr.msk.bf16.mxu1 %vm3794_vm0, %v2663_v50  ;;  %v3897_v56 = vsel %vm3794_vm0, %v2663_v50, 0  ;;  %2720 = vrot.lane.b32.xlu1 %v7115_v33, %s6244_s23  ;;  %v1384_v63 = vcombine.low %v6901_v38, %v6912_v4 }
 0x24e   : > { %v7120_v7 = vrot.slane %v1276_v17, %v6507_v29  ;;  %5826 = vmatprep.subr.msk.bf16.mxu0 %vm3794_vm0, %v2702_v51  ;;  %v2705_v46 = vpack.i.b16 %v2704_v9, %v2703_v0  ;;  %v1601_v39 = vshrl.u32 %v6908_v34, 16  ;;  %v2507_v28 = vcombine.high %v6860_v31, %v6828_v37  ;;  %2728 = vrot.lane.b32.xlu0 %v7115_v33, %s6245_s5 }
 0x24f   : > { %v1589_v24 = vshrl.u32 %v1234_v40, 16  ;;  %5665 = vmatpush3.bf16.xpose.msra.mxu1 %v3897_v56  ;;  %v3995_v43 = vsel %vm3794_vm0, %v2702_v51, 0  ;;  %v2557_v48 = vcombine.high %v6887_v32, %v6890_v3  ;;  %v7144_v17 = vpack.c.bf16 %v544_v26, %v541_v10 }
 0x250   : > { %v1284_v5 = vcombine.low %v7109_v52, %v7120_v7  ;;  %5830 = vmatprep.subr.msk.bf16.mxu1 %vm3794_vm0, %v2705_v46  ;;  %v1602_v50 = vshrl.u32 %v1384_v63, 16  ;;  %v1418_v37 = vcombine.low %v6983_v58, %v6986_v35  ;;  %v1600_v31 = vpack.i.b16 %v1384_v63, %v6908_v34 }
 0x251   : > { %v2690_v36 = vpack.i.b16 %v2557_v48, %v2507_v28  ;;  %2736 = vrot.lane.b32.xlu1 %v7115_v33, %s6243_s21  ;;  %v1426_v0 = vcombine.low %v6989_v44, %v6995_v14  ;;  %v7984_v32 = vcombine.low %v6977_v62, %v6980_v55  ;;  %v1467_v34 = vrot.slane %v5417_v16, %v6497_v18 }
 0x252   : > { %v1588_v23 = vpack.i.b16 %v1284_v5, %v1234_v40  ;;  %v1590_v22 = vshrl.u32 %v1284_v5, 16  ;;  %v7160_v40 = vrot.slane %v1418_v37, %v6507_v29  ;;  %v1468_v58 = vcombine.low %v6998_v15, %v7001_v2  ;;  %2726 = vrot.lane.b32.xlu0 %v7144_v17, %s6245_s5  ;;  %v7985_v5 = vld [vmem:[#allocation13_spill] sm:$0xff] }
 0x253   : > { %v1459_v3 = vrot.slane %v7984_v32, %v6497_v18  ;;  %v7170_v35 = vrot.slane %v1426_v0, %v6507_v29  ;;  %v2691_v44 = vshrl.u32 %v2507_v28, 16  ;;  %v2692_v14 = vshrl.u32 %v2557_v48, 16 }
 0x254   : > { %5650 = vmatprep.mubr.msk.bf16.mxu0 %vm3794_vm0, %v1588_v23  ;;  %v1591_v10 = vpack.i.b16 %v1590_v22, %v1589_v24  ;;  %v1518_v51 = vcombine.low %v7064_v54, %v7067_v27  ;;  %v1603_v62 = vpack.i.b16 %v1602_v50, %v1601_v39  ;;  %v1526_v15 = vcombine.low %v7070_v21, %v7076_v53 }
 0x255   : > { %5651 = vmatmul.mubr.msk.bf16.vlgmr.msra.gmra.mxu0 %vm3794_vm0, %v1600_v31  ;;  %v1476_v55 = vcombine.low %v1459_v3, %v1467_v34  ;;  %v4084_v2 = vsel %vm3794_vm0, %v2705_v46, 0  ;;  %v1434_v16 = vcombine.low %v7160_v40, %v7170_v35  ;;  %v7184_v9 = vrot.slane %v1468_v58, %v6507_v29  ;;  %2718 = vrot.lane.b32.xlu1 %v7144_v17, %s6244_s23 }
 0x256   : > { %5666 = vmatprep.mubr.msk.bf16.mxu1 %vm3794_vm0, %v1591_v10  ;;  %5675 = vmatpush3.bf16.xpose.msra.mxu0 %v3995_v43  ;;  %v2693_v26 = vpack.i.b16 %v2692_v14, %v2691_v44  ;;  %v7193_v27 = vrot.slane %v1526_v15, %v6507_v29  ;;  %v1559_v21 = vrot.slane %v1552_v49, %v6497_v18 }
 0x257   : > { %5827 = vmatprep.subr.msk.bf16.mxu0 %vm3794_vm0, %v2690_v36  ;;  %5667 = vmatmul.mubr.msk.bf16.vlgmr.msra.gmra.mxu1 %vm3794_vm0, %v1603_v62  ;;  %v7190_v54 = vrot.slane %v1476_v55, %v6507_v29  ;;  %v1567_v53 = vrot.slane %v5421_v57, %v6497_v18  ;;  %v7201_v56 = vrot.slane %v1518_v51, %v6507_v29  ;;  %v1613_v1 = vshrl.u32 %v1434_v16, 16 }
 0x258   : > { %5691 = vmatpush3.bf16.xpose.msra.mxu1 %v4084_v2  ;;  %v1568_v63 = vcombine.low %v7079_v13, %v7123_v25  ;;  %2716 = vrot.lane.b32.xlu0 %v7985_v5, %s6244_s23  ;;  %v2407_v30 = vcombine.high %v6944_v19, %v6947_v42  ;;  %v1285_v57 = vcombine.high %v7109_v52, %v7120_v7  ;;  %v3992_v19 = vsel %vm3794_vm0, %v2690_v36, 0 }
 0x259   : > { %v1484_v46 = vcombine.low %v7184_v9, %v7190_v54  ;;  %5831 = vmatprep.subr.msk.bf16.mxu1 %vm3794_vm0, %v2693_v26  ;;  %v1576_v39 = vcombine.low %v1559_v21, %v1567_v53  ;;  %v1534_v49 = vcombine.low %v7201_v56, %v7193_v27  ;;  %v2457_v13 = vcombine.high %v6974_v20, %v6992_v60 }
 0x25a   : > { %2734 = vrot.lane.b32.xlu1 %v7144_v17, %s6243_s21  ;;  %v1575_v24 = vrot.slane %v1568_v63, %v6507_v29  ;;  %v1235_v42 = vcombine.high %v7101_v45, %v7106_v61  ;;  %v2679_v52 = vshrl.u32 %v2407_v30, 16  ;;  %v4081_v22 = vsel %vm3794_vm0, %v2693_v26, 0 }
 0x25b   : > { %v1612_v25 = vpack.i.b16 %v1484_v46, %v1434_v16  ;;  %v1614_v28 = vshrl.u32 %v1484_v46, 16  ;;  %v1583_v43 = vrot.slane %v1576_v39, %v6507_v29  ;;  %v2678_v48 = vpack.i.b16 %v2457_v13, %v2407_v30 }
 0x25c   : > { %2732 = vrot.lane.b32.xlu0 %v7985_v5, %s6243_s21  ;;  %v2680_v7 = vshrl.u32 %v2457_v13, 16  ;;  %v1625_v23 = vshrl.u32 %v1534_v49, 16  ;;  %v1596_v50 = vshrl.u32 %v1285_v57, 16  ;;  %v2357_v31 = vcombine.high %v7061_v12, %v7073_v59 }
 0x25d   : > { %5654 = vmatprep.mubr.msk.bf16.mxu0 %vm3794_vm0, %v1612_v25  ;;  %v1615_v20 = vpack.i.b16 %v1614_v28, %v1613_v1  ;;  %v1584_v60 = vcombine.low %v1575_v24, %v1583_v43  ;;  %v1594_v36 = vpack.i.b16 %v1285_v57, %v1235_v42  ;;  %v1595_v0 = vshrl.u32 %v1235_v42, 16 }
 0x25e   : > { %5677 = vmatpush3.bf16.xpose.msra.mxu0 %v3992_v19  ;;  %2724 = vrot.lane.b32.xlu1 %v7985_v5, %s6245_s5  ;;  %v2681_v37 = vpack.i.b16 %v2680_v7, %v2679_v52  ;;  %v2307_v3 = vcombine.high %v7018_v47, %v7021_v8  ;;  %v2668_v34 = vshrl.u32 %v2357_v31, 16  ;;  %v3989_v12 = vsel %vm3794_vm0, %v2678_v48, 0 }
 0x25f   : > { %5828 = vmatprep.subr.msk.bf16.mxu0 %vm3794_vm0, %v2678_v48  ;;  %5670 = vmatprep.mubr.msk.bf16.mxu1 %vm3794_vm0, %v1615_v20  ;;  %v1624_v45 = vpack.i.b16 %v1584_v60, %v1534_v49  ;;  %v1626_v61 = vshrl.u32 %v1584_v60, 16  ;;  %v1597_v10 = vpack.i.b16 %v1596_v50, %v1595_v0  ;;  %v1385_v8 = vcombine.high %v6901_v38, %v6912_v4 }
 0x260   : > { %5693 = vmatpush3.bf16.xpose.msra.mxu1 %v4081_v22  ;;  %v2666_v59 = vpack.i.b16 %v2357_v31, %v2307_v3  ;;  %v2667_v58 = vshrl.u32 %v2307_v3, 16  ;;  %v4078_v44 = vsel %vm3794_vm0, %v2681_v37, 0  ;;  %v1485_v51 = vcombine.high %v7184_v9, %v7190_v54 }
 0x261   : > { %5655 = vmatmul.mubr.msk.bf16.gmra.mxu0 %vm3794_vm0, %v1624_v45  ;;  %v1627_v32 = vpack.i.b16 %v1626_v61, %v1625_v23  ;;  %5832 = vmatprep.subr.msk.bf16.mxu1 %vm3794_vm0, %v2681_v37  ;;  %v1335_v62 = vcombine.high %v6893_v41, %v6883_v11  ;;  %v1435_v15 = vcombine.high %v7160_v40, %v7170_v35  ;;  %v1608_v2 = vshrl.u32 %v1385_v8, 16 }
 0x262   : > { %5682 = vmatprep.mubr.msk.bf16.mxu0 %vm3794_vm0, %v1594_v36  ;;  %v2669_v14 = vpack.i.b16 %v2668_v34, %v2667_v58  ;;  %v3986_v47 = vsel %vm3794_vm0, %v2666_v59, 0  ;;  %v1620_v26 = vshrl.u32 %v1485_v51, 16  ;;  %v1585_v9 = vcombine.high %v1575_v24, %v1583_v43 }
 0x263   : > { %5671 = vmatmul.mubr.msk.bf16.gmra.mxu1 %vm3794_vm0, %v1627_v32  ;;  %v1606_v16 = vpack.i.b16 %v1385_v8, %v1335_v62  ;;  %v1618_v21 = vpack.i.b16 %v1485_v51, %v1435_v15  ;;  %v1607_v53 = vshrl.u32 %v1335_v62, 16  ;;  %v1619_v38 = vshrl.u32 %v1435_v15, 16 }
 0x264   : > { %5698 = vmatprep.mubr.msk.bf16.mxu1 %vm3794_vm0, %v1597_v10  ;;  %v4075_v55 = vsel %vm3794_vm0, %v2669_v14, 0  ;;  %v1535_v11 = vcombine.high %v7201_v56, %v7193_v27  ;;  %v1632_v41 = vshrl.u32 %v1585_v9, 16  ;;  %v2790_v46 = vshrl.u32 %v7115_v33, 16 }
 0x265   : > { %v1609_v4 = vpack.i.b16 %v1608_v2, %v1607_v53  ;;  %v1621_v54 = vpack.i.b16 %v1620_v26, %v1619_v38  ;;  %v2774_v48 = vshrl.u32 %v7144_v17, 16 }
 0x266   : > { %5679 = vmatpush3.bf16.xpose.msra.mxu0 %v3989_v12  ;;  %v1630_v40 = vpack.i.b16 %v1585_v9, %v1535_v11  ;;  %v1631_v35 = vshrl.u32 %v1535_v11, 16 }
 0x267   : > { %5829 = vmatprep.subr.msk.bf16.mxu0 %vm3794_vm0, %v2666_v59 }
 0x268   : > { %5695 = vmatpush3.bf16.xpose.msra.mxu1 %v4078_v44  ;;  %v1633_v63 = vpack.i.b16 %v1632_v41, %v1631_v35 }
 0x269   : > { %5833 = vmatprep.subr.msk.bf16.mxu1 %vm3794_vm0, %v2669_v14 }
 0x26e   : > { %5681 = vmatpush3.bf16.xpose.msra.mxu0 %v3986_v47 }
 0x270   : > { %5697 = vmatpush3.bf16.xpose.msra.mxu1 %v4075_v55 }
 0x275   : > { %5683 = vmatmul.mubr.msk.bf16.vlgmr.msra.gmra.mxu0 %vm3794_vm0, %v1606_v16 }
 0x276   : > { %5686 = vmatprep.mubr.msk.bf16.mxu0 %vm3794_vm0, %v1618_v21 }
 0x277   : > { %5699 = vmatmul.mubr.msk.bf16.vlgmr.msra.gmra.mxu1 %vm3794_vm0, %v1609_v4 }
 0x278   : > { %5702 = vmatprep.mubr.msk.bf16.mxu1 %vm3794_vm0, %v1621_v54 }
 0x27d   : > { %5687 = vmatmul.mubr.msk.bf16.gmra.mxu0 %vm3794_vm0, %v1630_v40 }
 0x27f   : > { %5703 = vmatmul.mubr.msk.bf16.gmra.mxu1 %vm3794_vm0, %v1633_v63 }
 0x2bf   : > { %v2721_v39 = vpop.permute.xlu1 %2720 }
 0x2c0   : > { %v2788_v30 = vpack.i.b16 %v2721_v39, %v7115_v33  ;;  %v2791_v1 = vshrl.u32 %v2721_v39, 16  ;;  %v2729_v49 = vpop.permute.xlu0 %2728  ;;  %v2758_v33 = vshrl.u32 %v7985_v5, 16 }
 0x2c1   : > { %v2798_v13 = vshrl.u32 %v2729_v49, 16 }
 0x2c2   : > { %v2792_v57 = vpack.i.b16 %v2791_v1, %v2790_v46  ;;  %v3198_v27 = vcombine.high %v2788_v30, %v6492_v6  ;;  %v3205_v24 = vrot.slane %v2788_v30, %v6497_v18 }
 0x2c3   : > { %v2737_v56 = vpop.permute.xlu1 %2736 }
 0x2c4   : > { %v3264_v25 = vcombine.high %v2792_v57, %v6492_v6  ;;  %v2799_v28 = vshrl.u32 %v2737_v56, 16  ;;  %v2796_v43 = vpack.i.b16 %v2737_v56, %v2729_v49  ;;  %v3271_v19 = vrot.slane %v2792_v57, %v6497_v18  ;;  %v2727_v22 = vpop.permute.xlu0 %2726 }
 0x2c5   : > { %v3212_v20 = vrot.slane %v3198_v27, %v6497_v18  ;;  %v2782_v37 = vshrl.u32 %v2727_v22, 16 }
 0x2c6   : > { %v2800_v42 = vpack.i.b16 %v2799_v28, %v2798_v13  ;;  %v3278_v60 = vrot.slane %v3264_v25, %v6497_v18  ;;  %v3213_v52 = vcombine.high %v2796_v43, %v6492_v6  ;;  %v3220_v7 = vrot.slane %v2796_v43, %v6497_v18 }
 0x2c7   : > { %v2719_v23 = vpop.permute.xlu1 %2718 }
 0x2c8   : > { %v3279_v50 = vcombine.high %v2800_v42, %v6492_v6  ;;  %v3286_v45 = vrot.slane %v2800_v42, %v6497_v18  ;;  %v2775_v61 = vshrl.u32 %v2719_v23, 16  ;;  %v3227_v31 = vrot.slane %v3213_v52, %v6497_v18 }
 0x2c9   : > { %v3228_v36 = vcombine.low %v3205_v24, %v3220_v7  ;;  %v3229_v0 = vcombine.high %v3205_v24, %v3220_v7  ;;  %v2772_v32 = vpack.i.b16 %v2719_v23, %v7144_v17 }
 0x2ca   : > { %v3293_v3 = vrot.slane %v3279_v50, %v6497_v18  ;;  %v3294_v10 = vcombine.low %v3271_v19, %v3286_v45  ;;  %v3295_v34 = vcombine.high %v3271_v19, %v3286_v45  ;;  %v2776_v12 = vpack.i.b16 %v2775_v61, %v2774_v48  ;;  %v2717_v26 = vpop.permute.xlu0 %2716 }
 0x2cb   : > { %v3236_v59 = vrot.slane %v3228_v36, %v6507_v29  ;;  %v3243_v58 = vrot.slane %v3229_v0, %v6507_v29  ;;  %v3244_v44 = vcombine.low %v3212_v20, %v3227_v31  ;;  %v3245_v14 = vcombine.high %v3212_v20, %v3227_v31 }
 0x2cc   : > { %v2735_v47 = vpop.permute.xlu1 %2734  ;;  %v7284_v8 = vrot.slane %v3294_v10, %v6507_v29  ;;  %v7287_v51 = vrot.slane %v3295_v34, %v6507_v29  ;;  %v3310_v62 = vcombine.low %v3278_v60, %v3293_v3  ;;  %v3311_v17 = vcombine.high %v3278_v60, %v3293_v3 }
 0x2cd   : > { %v7290_v55 = vrot.slane %v3244_v44, %v6507_v29  ;;  %v7293_v15 = vrot.slane %v3245_v14, %v6507_v29  ;;  %v3630_v2 = vcombine.low %v3236_v59, %v3243_v58  ;;  %v5450_v16 = vcombine.high %v3236_v59, %v3243_v58 }
 0x2ce   : > { %v7296_v21 = vrot.slane %v3310_v62, %v6507_v29  ;;  %v7299_v53 = vrot.slane %v3311_v17, %v6507_v29  ;;  %v3680_v38 = vcombine.low %v7284_v8, %v7287_v51  ;;  %v5452_v4 = vcombine.high %v7284_v8, %v7287_v51  ;;  %v2733_v42 = vpop.permute.xlu0 %2732 }
 0x2cf   : > { %v7306_v9 = vrot.slane %v3630_v2, %v6497_v18  ;;  %v7309_v54 = vrot.slane %v5450_v16, %v6497_v18  ;;  %v3646_v11 = vcombine.low %v7290_v55, %v7293_v15  ;;  %v5451_v41 = vcombine.high %v7290_v55, %v7293_v15 }
 0x2d0   : > { %v7315_v40 = vpop.permute.xlu1 %2724  ;;  %v3696_v35 = vcombine.low %v7296_v21, %v7299_v53  ;;  %v5453_v63 = vcombine.high %v7296_v21, %v7299_v53  ;;  %v3066_v46 = vcombine.high %v2772_v32, %v6492_v6  ;;  %v3073_v39 = vrot.slane %v2772_v32, %v6497_v18 }
 0x2d1   : > { %v3132_v30 = vcombine.high %v2776_v12, %v6492_v6  ;;  %v3139_v1 = vrot.slane %v2776_v12, %v6497_v18  ;;  %v2780_v49 = vpack.i.b16 %v2735_v47, %v2727_v22  ;;  %v2783_v57 = vshrl.u32 %v2735_v47, 16 }
 0x2d2   : > { %v3080_v13 = vrot.slane %v3066_v46, %v6497_v18  ;;  %v2756_v27 = vpack.i.b16 %v2717_v26, %v7985_v5  ;;  %v2759_v56 = vshrl.u32 %v2717_v26, 16  ;;  %v2766_v25 = vshrl.u32 %v7315_v40, 16 }
 0x2d3   : > { %v3146_v28 = vrot.slane %v3132_v30, %v6497_v18  ;;  %v2784_v24 = vpack.i.b16 %v2783_v57, %v2782_v37  ;;  %v3081_v43 = vcombine.high %v2780_v49, %v6492_v6  ;;  %v3088_v19 = vrot.slane %v2780_v49, %v6497_v18 }
 0x2d4   : > { %v2760_v48 = vpack.i.b16 %v2759_v56, %v2758_v33  ;;  %v2934_v20 = vcombine.high %v2756_v27, %v6492_v6  ;;  %v2941_v60 = vrot.slane %v2756_v27, %v6497_v18  ;;  %v2764_v52 = vpack.i.b16 %v2733_v42, %v7315_v40 }
 0x2d5   : > { %v3095_v5 = vrot.slane %v3081_v43, %v6497_v18  ;;  %v3096_v7 = vcombine.low %v3073_v39, %v3088_v19  ;;  %v3097_v23 = vcombine.high %v3073_v39, %v3088_v19  ;;  %v3147_v22 = vcombine.high %v2784_v24, %v6492_v6 }
 0x2d6   : > { %v3154_v50 = vrot.slane %v2784_v24, %v6497_v18  ;;  %v2948_v45 = vrot.slane %v2934_v20, %v6497_v18  ;;  %v3000_v61 = vcombine.high %v2760_v48, %v6492_v6  ;;  %v7340_v33 = vrot.slane %v2760_v48, %v6497_v18 }
 0x2d7   : > { %v3104_v37 = vrot.slane %v3096_v7, %v6507_v29  ;;  %v3111_v31 = vrot.slane %v3097_v23, %v6507_v29  ;;  %v3112_v36 = vcombine.low %v3080_v13, %v3095_v5  ;;  %v3113_v0 = vcombine.high %v3080_v13, %v3095_v5 }
 0x2d8   : > { %v3161_v32 = vrot.slane %v3147_v22, %v6497_v18  ;;  %v3162_v3 = vcombine.low %v3139_v1, %v3154_v50  ;;  %v3163_v10 = vcombine.high %v3139_v1, %v3154_v50  ;;  %v7346_v34 = vrot.slane %v3000_v61, %v6497_v18 }
 0x2d9   : > { %v7349_v12 = vrot.slane %v3112_v36, %v6507_v29  ;;  %v7352_v59 = vrot.slane %v3113_v0, %v6507_v29  ;;  %v3530_v58 = vcombine.low %v3104_v37, %v3111_v31  ;;  %v5446_v44 = vcombine.high %v3104_v37, %v3111_v31 }
 0x2da   : > { %v7355_v14 = vrot.slane %v3162_v3, %v6507_v29  ;;  %v7358_v47 = vrot.slane %v3163_v10, %v6507_v29  ;;  %v3178_v62 = vcombine.low %v3146_v28, %v3161_v32  ;;  %v3179_v17 = vcombine.high %v3146_v28, %v3161_v32 }
 0x2db   : > { %v7361_v55 = vrot.slane %v3530_v58, %v6497_v18  ;;  %v7364_v15 = vrot.slane %v5446_v44, %v6497_v18  ;;  %v3546_v2 = vcombine.low %v7349_v12, %v7352_v59  ;;  %v5447_v16 = vcombine.high %v7349_v12, %v7352_v59 }
 0x2dc   : > { %v7371_v26 = vrot.slane %v3178_v62, %v6507_v29  ;;  %v7374_v40 = vrot.slane %v3179_v17, %v6507_v29  ;;  %v3580_v46 = vcombine.low %v7355_v14, %v7358_v47  ;;  %v5448_v39 = vcombine.high %v7355_v14, %v7358_v47 }
 0x2dd   : > { %v2767_v30 = vshrl.u32 %v2733_v42, 16  ;;  %v2949_v1 = vcombine.high %v2764_v52, %v6492_v6  ;;  %v2956_v49 = vrot.slane %v2764_v52, %v6497_v18  ;;  %v3653_v57 = vrot.slane %v3646_v11, %v6497_v18 }
 0x2de   : > { %v3596_v13 = vcombine.low %v7371_v26, %v7374_v40  ;;  %v5449_v27 = vcombine.high %v7371_v26, %v7374_v40  ;;  %v3661_v56 = vrot.slane %v5451_v41, %v6497_v18  ;;  %v3662_v28 = vcombine.low %v7306_v9, %v7309_v54 }
 0x2df   : > { %v2768_v24 = vpack.i.b16 %v2767_v30, %v2766_v25  ;;  %v2963_v43 = vrot.slane %v2949_v1, %v6497_v18  ;;  %v2964_v19 = vcombine.low %v2941_v60, %v2956_v49  ;;  %v2965_v42 = vcombine.high %v2941_v60, %v2956_v49 }
 0x2e0   : > { %v7392_v48 = vrot.slane %v3662_v28, %v6507_v29  ;;  %v3670_v11 = vcombine.low %v3653_v57, %v3661_v56  ;;  %v3687_v20 = vrot.slane %v3680_v38, %v6497_v18  ;;  %v3695_v41 = vrot.slane %v5452_v4, %v6497_v18 }
 0x2e1   : > { %v2972_v9 = vrot.slane %v2964_v19, %v6507_v29  ;;  %v2979_v54 = vrot.slane %v2965_v42, %v6507_v29  ;;  %v2980_v25 = vcombine.low %v2948_v45, %v2963_v43  ;;  %v2981_v60 = vcombine.high %v2948_v45, %v2963_v43 }
 0x2e2   : > { %v3015_v52 = vcombine.high %v2768_v24, %v6492_v6  ;;  %v3022_v5 = vrot.slane %v2768_v24, %v6497_v18  ;;  %v3677_v7 = vrot.slane %v3670_v11, %v6507_v29  ;;  %v3703_v38 = vrot.slane %v3696_v35, %v6497_v18 }
 0x2e3   : > { %v2988_v8 = vrot.slane %v2980_v25, %v6507_v29  ;;  %v2995_v51 = vrot.slane %v2981_v60, %v6507_v29  ;;  %v3430_v4 = vcombine.low %v2972_v9, %v2979_v54  ;;  %v5442_v23 = vcombine.high %v2972_v9, %v2979_v54 }
 0x2e4   : > { %v3029_v22 = vrot.slane %v3015_v52, %v6497_v18  ;;  %v3030_v50 = vcombine.low %v7340_v33, %v3022_v5  ;;  %v3031_v45 = vcombine.high %v7340_v33, %v3022_v5  ;;  %v3678_v61 = vcombine.low %v7392_v48, %v3677_v7 }
 0x2e5   : > { %v3437_v37 = vrot.slane %v3430_v4, %v6497_v18  ;;  %v3445_v31 = vrot.slane %v5442_v23, %v6497_v18  ;;  %v3446_v36 = vcombine.low %v2988_v8, %v2995_v51  ;;  %v5443_v35 = vcombine.high %v2988_v8, %v2995_v51 }
 0x2e6   : > { %v3038_v0 = vrot.slane %v3030_v50, %v6507_v29  ;;  %v3045_v32 = vrot.slane %v3031_v45, %v6507_v29  ;;  %v3046_v3 = vcombine.low %v7346_v34, %v3029_v22  ;;  %v3047_v10 = vcombine.high %v7346_v34, %v3029_v22 }
 0x2e7   : > { %v3711_v33 = vrot.slane %v5453_v63, %v6497_v18  ;;  %v3712_v12 = vcombine.low %v3687_v20, %v3695_v41  ;;  %v3782_v59 = vshrl.u32 %v3678_v61, 16  ;;  %v3553_v58 = vrot.slane %v3546_v2, %v6497_v18 }
 0x2e8   : > { %v3054_v44 = vrot.slane %v3046_v3, %v6507_v29  ;;  %v3061_v14 = vrot.slane %v3047_v10, %v6507_v29  ;;  %v3480_v47 = vcombine.low %v3038_v0, %v3045_v32  ;;  %v5444_v62 = vcombine.high %v3038_v0, %v3045_v32 }
 0x2e9   : > { %v3719_v17 = vrot.slane %v3712_v12, %v6507_v29  ;;  %v3720_v26 = vcombine.low %v3703_v38, %v3711_v33  ;;  %v3561_v34 = vrot.slane %v5447_v16, %v6497_v18  ;;  %v3562_v40 = vcombine.low %v7361_v55, %v7364_v15 }
 0x2ea   : > { %v3496_v21 = vcombine.low %v3054_v44, %v3061_v14  ;;  %v5445_v53 = vcombine.high %v3054_v44, %v3061_v14  ;;  %v3587_v63 = vrot.slane %v3580_v46, %v6497_v18  ;;  %v3595_v2 = vrot.slane %v5448_v39, %v6497_v18 }
 0x2eb   : > { %v3727_v30 = vrot.slane %v3720_v26, %v6507_v29  ;;  %v3569_v1 = vrot.slane %v3562_v40, %v6507_v29  ;;  %v3570_v49 = vcombine.low %v3553_v58, %v3561_v34  ;;  %v3603_v57 = vrot.slane %v3596_v13, %v6497_v18 }
 0x2ec   : > { %v3611_v56 = vrot.slane %v5449_v27, %v6497_v18  ;;  %v3612_v28 = vcombine.low %v3587_v63, %v3595_v2  ;;  %v3453_v16 = vrot.slane %v3446_v36, %v6497_v18  ;;  %v3461_v55 = vrot.slane %v5443_v35, %v6497_v18 }
 0x2ed   : > { %v3728_v15 = vcombine.low %v3719_v17, %v3727_v30  ;;  %v3577_v24 = vrot.slane %v3570_v49, %v6507_v29  ;;  %v3462_v46 = vcombine.low %v3437_v37, %v3445_v31  ;;  %v3487_v39 = vrot.slane %v3480_v47, %v6497_v18 }
 0x2ee   : > { %v3619_v43 = vrot.slane %v3612_v28, %v6507_v29  ;;  %v3620_v19 = vcombine.low %v3603_v57, %v3611_v56  ;;  %v3470_v42 = vcombine.low %v3453_v16, %v3461_v55  ;;  %v3495_v11 = vrot.slane %v5444_v62, %v6497_v18 }
 0x2ef   : > { %v3780_v13 = vpack.i.b16 %v3728_v15, %v3678_v61  ;;  %v3783_v20 = vshrl.u32 %v3728_v15, 16  ;;  %v3578_v27 = vcombine.low %v3569_v1, %v3577_v24  ;;  %v3469_v41 = vrot.slane %v3462_v46, %v6507_v29 }
 0x2f0   : > { %v3627_v9 = vrot.slane %v3620_v19, %v6507_v29  ;;  %v3477_v54 = vrot.slane %v3470_v42, %v6507_v29  ;;  %v3503_v25 = vrot.slane %v3496_v21, %v6497_v18  ;;  %v3511_v60 = vrot.slane %v5445_v53, %v6497_v18 }
 0x2f1   : > { %5706 = vmatprep.subr.bf16.mxu0 %v3780_v13  ;;  %v3784_v52 = vpack.i.b16 %v3783_v20, %v3782_v59  ;;  %v3766_v5 = vshrl.u32 %v3578_v27, 16  ;;  %v3512_v38 = vcombine.low %v3487_v39, %v3495_v11  ;;  %v3679_v8 = vcombine.high %v7392_v48, %v3677_v7 }
 0x2f2   : > { %5707 = vmatpush3.bf16.msra.mxu0 %v3780_v13  ;;  %v3628_v51 = vcombine.low %v3619_v43, %v3627_v9  ;;  %v3478_v4 = vcombine.low %v3469_v41, %v3477_v54  ;;  %v3520_v23 = vcombine.low %v3503_v25, %v3511_v60  ;;  %v3729_v22 = vcombine.high %v3719_v17, %v3727_v30 }
 0x2f3   : > { %5722 = vmatprep.subr.bf16.mxu1 %v3784_v52  ;;  %v3519_v50 = vrot.slane %v3512_v38, %v6507_v29  ;;  %v3790_v45 = vshrl.u32 %v3679_v8, 16  ;;  %v3579_v61 = vcombine.high %v3569_v1, %v3577_v24  ;;  %v3629_v37 = vcombine.high %v3619_v43, %v3627_v9 }
 0x2f4   : > { %5723 = vmatpush3.bf16.msra.mxu1 %v3784_v52  ;;  %v3764_v31 = vpack.i.b16 %v3628_v51, %v3578_v27  ;;  %v3767_v36 = vshrl.u32 %v3628_v51, 16  ;;  %v3527_v35 = vrot.slane %v3520_v23, %v6507_v29  ;;  %v3750_v0 = vshrl.u32 %v3478_v4, 16 }
 0x2f5   : > { %v7454_v32 = vpack.i.b16 %v3729_v22, %v3679_v8  ;;  %v3791_v48 = vshrl.u32 %v3729_v22, 16  ;;  %v7456_v7 = vpack.i.b16 %v3629_v37, %v3579_v61  ;;  %v3479_v3 = vcombine.high %v3469_v41, %v3477_v54 }
 0x2f6   : > { %5708 = vmatprep.subr.bf16.mxu0 %v3764_v31  ;;  %v3768_v10 = vpack.i.b16 %v3767_v36, %v3766_v5  ;;  %v3528_v33 = vcombine.low %v3519_v50, %v3527_v35  ;;  %v3529_v12 = vcombine.high %v3519_v50, %v3527_v35  ;;  %v3774_v59 = vshrl.u32 %v3579_v61, 16 }
 0x2f7   : > { %5709 = vmatpush3.bf16.msra.mxu0 %v3764_v31  ;;  %v7458_v58 = vpack.i.b16 %v3791_v48, %v3790_v45  ;;  %v3775_v44 = vshrl.u32 %v3629_v37, 16  ;;  %v3758_v14 = vshrl.u32 %v3479_v3, 16 }
 0x2f8   : > { %5724 = vmatprep.subr.bf16.mxu1 %v3768_v10  ;;  %v3748_v47 = vpack.i.b16 %v3528_v33, %v3478_v4  ;;  %v3751_v62 = vshrl.u32 %v3528_v33, 16  ;;  %v7460_v17 = vpack.i.b16 %v3529_v12, %v3479_v3  ;;  %v3759_v26 = vshrl.u32 %v3529_v12, 16 }
 0x2f9   : > { %5725 = vmatpush3.bf16.msra.mxu1 %v3768_v10  ;;  %v7462_v34 = vpack.i.b16 %v3775_v44, %v3774_v59 }
 0x2fa   : > { %5710 = vmatprep.subr.bf16.mxu0 %v3748_v47  ;;  %v3752_v40 = vpack.i.b16 %v3751_v62, %v3750_v0  ;;  %v7464_v21 = vpack.i.b16 %v3759_v26, %v3758_v14 }
 0x2fb   : > { %5711 = vmatpush3.bf16.msra.mxu0 %v3748_v47 }
 0x2fc   : > { %5726 = vmatprep.subr.bf16.mxu1 %v3752_v40 }
 0x2fd   : > { %5727 = vmatpush3.bf16.msra.mxu1 %v3752_v40 }
 0x315   : > { %v7466_v53 = vpop.f32.mrf.mxu0 }
 0x316   : > { %v4158_v63 = vsel %vm4151_vm1, %v7466_v53, -inf }
 0x317   : > { %4159 = vmax.xlane.f32.xlu0 %v4158_v63  ;;  %v7470_v2 = vpop.f32.mrf.mxu0  ;;  %v7472_v30 = vpop.f32.mrf.mxu1 }
 0x318   : > { %v4182_v1 = vsel %vm4151_vm1, %v7472_v30, -inf  ;;  %v4152_v56 = vsel %vm4151_vm1, %v7470_v2, -inf }
 0x319   : > { %4183 = vmax.xlane.f32.xlu1 %v4182_v1  ;;  %v7476_v49 = vpop.f32.mrf.mxu0  ;;  %v7478_v57 = vpop.f32.mrf.mxu1 }
 0x31a   : > { %v4176_v28 = vsel %vm4151_vm1, %v7478_v57, -inf  ;;  %v4161_v55 = vsel %vm4151_vm1, %v7476_v49, -inf }
 0x31b   : > { %4153 = vmax.xlane.f32.xlu0 %v4152_v56  ;;  %v7484_v16 = vpop.f32.mrf.mxu0  ;;  %v7488_v15 = vpop.f32.mrf.mxu1 }
 0x31c   : > { %v4155_v24 = vsel %vm4151_vm1, %v7484_v16, -inf  ;;  %v4185_v39 = vsel %vm4151_vm1, %v7488_v15, -inf }
 0x31d   : > { %4177 = vmax.xlane.f32.xlu1 %v4176_v28  ;;  %v7496_v43 = vpop.f32.mrf.mxu1 }
 0x31e   : > { %v4179_v11 = vsel %vm4151_vm1, %v7496_v43, -inf }
 0x31f   : > { %4162 = vmax.xlane.f32.xlu0 %v4161_v55 }
 0x321   : > { %v7492_v46 = vpop.f32.mrf.mxu0  ;;  %4156 = vmax.xlane.f32.xlu1 %v4155_v24 }
 0x322   : > { %v4170_v42 = vsel %vm4151_vm1, %v7492_v46, -inf }
 0x323   : > { %4186 = vmax.xlane.f32.xlu0 %v4185_v39  ;;  %v7498_v19 = vpop.f32.mrf.mxu0  ;;  %v7504_v13 = vpop.f32.mrf.mxu1 }
 0x324   : > { %v4164_v27 = vsel %vm4151_vm1, %v7498_v19, -inf  ;;  %v4194_v25 = vsel %vm4151_vm1, %v7504_v13, -inf }
 0x325   : > { %4171 = vmax.xlane.f32.xlu1 %v4170_v42  ;;  %v7506_v20 = vpop.f32.mrf.mxu0  ;;  %v7512_v9 = vpop.f32.mrf.mxu1 }
 0x326   : > { %v4173_v41 = vsel %vm4151_vm1, %v7506_v20, -inf  ;;  %v4188_v5 = vsel %vm4151_vm1, %v7512_v9, -inf }
 0x327   : > { %4180 = vmax.xlane.f32.xlu0 %v4179_v11  ;;  %v7514_v54 = vpop.f32.mrf.mxu0  ;;  %v7520_v52 = vpop.f32.mrf.mxu1 }
 0x328   : > { %v4167_v60 = vsel %vm4151_vm1, %v7514_v54, -inf  ;;  %v4197_v38 = vsel %vm4151_vm1, %v7520_v52, -inf }
 0x329   : > { %4165 = vmax.xlane.f32.xlu1 %v4164_v27  ;;  %v7526_v8 = vpop.f32.mrf.mxu1  ;;  %v7986_v27 = vld [vmem:[#allocation12_spill] sm:$0xff] }
 0x32a   : > { %v4191_v4 = vsel %vm4151_vm1, %v7526_v8, -inf }
 0x32b   : > { %4174 = vmax.xlane.f32.xlu0 %v4173_v41 }
 0x32d   : > { %4195 = vmax.xlane.f32.xlu1 %v4194_v25 }
 0x32f   : > { %4168 = vmax.xlane.f32.xlu0 %v4167_v60 }
 0x331   : > { %4189 = vmax.xlane.f32.xlu1 %v4188_v5 }
 0x333   : > { %4198 = vmax.xlane.f32.xlu0 %v4197_v38 }
 0x335   : > { %v7528_v51 = vpop.f32.mrf.mxu0 }
 0x336   : > { %v4206_v23 = vsel %vm4151_vm1, %v7528_v51, -inf }
 0x337   : > { %4192 = vmax.xlane.f32.xlu0 %v4191_v4  ;;  %4207 = vmax.xlane.f32.xlu1 %v4206_v23  ;;  %v7534_v22 = vpop.f32.mrf.mxu0  ;;  %v7536_v50 = vpop.f32.mrf.mxu1 }
 0x338   : > { %v4200_v61 = vsel %vm4151_vm1, %v7534_v22, -inf  ;;  %v4230_v35 = vsel %vm4151_vm1, %v7536_v50, -inf }
 0x339   : > { %v7538_v45 = vpop.f32.mrf.mxu0  ;;  %v7544_v31 = vpop.f32.mrf.mxu1 }
 0x33a   : > { %v4209_v37 = vsel %vm4151_vm1, %v7538_v45, -inf  ;;  %v4224_v10 = vsel %vm4151_vm1, %v7544_v31, -inf }
 0x33b   : > { %4201 = vmax.xlane.f32.xlu1 %v4200_v61  ;;  %4210 = vmax.xlane.f32.xlu0 %v4209_v37  ;;  %v7546_v36 = vpop.f32.mrf.mxu0  ;;  %v7552_v48 = vpop.f32.mrf.mxu1 }
 0x33c   : > { %v4203_v0 = vsel %vm4151_vm1, %v7546_v36, -inf  ;;  %v4233_v33 = vsel %vm4151_vm1, %v7552_v48, -inf }
 0x33d   : > { %v7554_v3 = vpop.f32.mrf.mxu0  ;;  %v7560_v12 = vpop.f32.mrf.mxu1 }
 0x33e   : > { %v4227_v44 = vsel %vm4151_vm1, %v7560_v12, -inf  ;;  %v4218_v14 = vsel %vm4151_vm1, %v7554_v3, -inf }
 0x33f   : > { %4231 = vmax.xlane.f32.xlu1 %v4230_v35  ;;  %4204 = vmax.xlane.f32.xlu0 %v4203_v0  ;;  %v7562_v59 = vpop.f32.mrf.mxu0  ;;  %v7568_v47 = vpop.f32.mrf.mxu1 }
 0x340   : > { %v4212_v26 = vsel %vm4151_vm1, %v7562_v59, -inf  ;;  %v4242_v56 = vsel %vm4151_vm1, %v7568_v47, -inf }
 0x341   : > { %v7570_v62 = vpop.f32.mrf.mxu0  ;;  %v7576_v63 = vpop.f32.mrf.mxu1 }
 0x342   : > { %v4221_v40 = vsel %vm4151_vm1, %v7570_v62, -inf  ;;  %v4236_v24 = vsel %vm4151_vm1, %v7576_v63, -inf }
 0x343   : > { %4225 = vmax.xlane.f32.xlu1 %v4224_v10  ;;  %4234 = vmax.xlane.f32.xlu0 %v4233_v33  ;;  %v7578_v1 = vpop.f32.mrf.mxu0  ;;  %v7584_v55 = vpop.f32.mrf.mxu1 }
 0x344   : > { %v4215_v28 = vsel %vm4151_vm1, %v7578_v1, -inf  ;;  %v4245_v39 = vsel %vm4151_vm1, %v7584_v55, -inf }
 0x345   : > { %v7590_v42 = vpop.f32.mrf.mxu1 }
 0x346   : > { %v4239_v11 = vsel %vm4151_vm1, %v7590_v42, -inf }
 0x347   : > { %4228 = vmax.xlane.f32.xlu0 %v4227_v44  ;;  %4219 = vmax.xlane.f32.xlu1 %v4218_v14 }
 0x34b   : > { %4213 = vmax.xlane.f32.xlu1 %v4212_v26  ;;  %4222 = vmax.xlane.f32.xlu0 %v4221_v40 }
 0x34f   : > { %4243 = vmax.xlane.f32.xlu1 %v4242_v56  ;;  %4216 = vmax.xlane.f32.xlu0 %v4215_v28 }
 0x353   : > { %4237 = vmax.xlane.f32.xlu1 %v4236_v24  ;;  %4246 = vmax.xlane.f32.xlu0 %v4245_v39 }
 0x357   : > { %4240 = vmax.xlane.f32.xlu0 %v4239_v11 }
 0x364   : > { %2722 = vrot.lane.b32.xlu1 %v7986_v27, %s6245_s5 }
 0x368   : > { %2730 = vrot.lane.b32.xlu1 %v7986_v27, %s6243_s21 }
 0x36d   : > { %2714 = vrot.lane.b32.xlu0 %v7986_v27, %s6244_s23 }
 0x3a0   : > { %v4160_v41 = vpop.xlane.xlu0 %4159 }
 0x3a1   : > { %v4250_v25 = vsub.f32 %v7466_v53, %v4160_v41 }
 0x3a2   : > { %v4184_v5 = vpop.xlane.xlu1 %4183 }
 0x3a3   : > { %v4284_v60 = vmul.f32 1.442695, %v4250_v25  ;;  %v4258_v38 = vsub.f32 %v7472_v30, %v4184_v5 }
 0x3a4   : > { %v4154_v4 = vpop.xlane.xlu0 %4153 }
 0x3a5   : > { %5955 = vpow2.f32 %v4284_v60  ;;  %v4248_v23 = vsub.f32 %v7470_v2, %v4154_v4  ;;  %v4300_v61 = vmul.f32 1.442695, %v4258_v38 }
 0x3a6   : > { %v4178_v35 = vpop.xlane.xlu1 %4177 }
 0x3a7   : > { %v4280_v37 = vmul.f32 1.442695, %v4248_v23  ;;  %5957 = vpow2.f32 %v4300_v61  ;;  %v4256_v0 = vsub.f32 %v7478_v57, %v4178_v35 }
 0x3a8   : > { %v4163_v10 = vpop.xlane.xlu0 %4162 }
 0x3a9   : > { %5959 = vpow2.f32 %v4280_v37  ;;  %v4251_v33 = vsub.f32 %v7476_v49, %v4163_v10  ;;  %v4296_v44 = vmul.f32 1.442695, %v4256_v0 }
 0x3aa   : > { %v4157_v14 = vpop.xlane.xlu1 %4156 }
 0x3ab   : > { %v4286_v53 = vmul.f32 1.442695, %v4251_v33  ;;  %5961 = vpow2.f32 %v4296_v44  ;;  %v4249_v30 = vsub.f32 %v7484_v16, %v4157_v14 }
 0x3ac   : > { %v4187_v26 = vpop.xlane.xlu0 %4186 }
 0x3ad   : > { %5963 = vpow2.f32 %v4286_v53  ;;  %v4259_v2 = vsub.f32 %v7488_v15, %v4187_v26  ;;  %v4282_v40 = vmul.f32 1.442695, %v4249_v30 }
 0x3ae   : > { %v4172_v28 = vpop.xlane.xlu1 %4171 }
 0x3af   : > { %v4302_v56 = vmul.f32 1.442695, %v4259_v2  ;;  %5965 = vpow2.f32 %v4282_v40  ;;  %v4254_v57 = vsub.f32 %v7492_v46, %v4172_v28 }
 0x3b0   : > { %v4181_v24 = vpop.xlane.xlu0 %4180 }
 0x3b1   : > { %5967 = vpow2.f32 %v4302_v56  ;;  %v4257_v49 = vsub.f32 %v7496_v43, %v4181_v24  ;;  %v4292_v11 = vmul.f32 1.442695, %v4254_v57 }
 0x3b2   : > { %v7609_v39 = vpop.eup %5955  ;;  %v4166_v25 = vpop.xlane.xlu1 %4165 }
 0x3b3   : > { %v4298_v41 = vmul.f32 1.442695, %v4257_v49  ;;  %v4350_v16 = vsel %vm4151_vm1, %v7609_v39, 0.0  ;;  %v4252_v15 = vsub.f32 %v7498_v19, %v4166_v25 }
 0x3b4   : > { %v4175_v60 = vpop.xlane.xlu0 %4174  ;;  %4351 = vadd.xlane.f32.xlu0 %v4350_v16  ;;  %v7614_v5 = vpop.eup %5957 }
 0x3b5   : > { %5969 = vpow2.f32 %v4298_v41  ;;  %v4255_v46 = vsub.f32 %v7506_v20, %v4175_v60  ;;  %v4288_v43 = vmul.f32 1.442695, %v4252_v15  ;;  %v4374_v37 = vsel %vm4151_vm1, %v7614_v5, 0.0 }
 0x3b6   : > { %v7617_v38 = vpop.eup %5959  ;;  %5971 = vpow2.f32 %v4292_v11  ;;  %v4196_v23 = vpop.xlane.xlu1 %4195 }
 0x3b7   : > { %v4294_v4 = vmul.f32 1.442695, %v4255_v46  ;;  %v4344_v61 = vsel %vm4151_vm1, %v7617_v38, 0.0  ;;  %5973 = vpow2.f32 %v4288_v43  ;;  %v4262_v19 = vsub.f32 %v7504_v13, %v4196_v23 }
 0x3b8   : > { %v4169_v35 = vpop.xlane.xlu0 %4168  ;;  %4345 = vadd.xlane.f32.xlu1 %v4344_v61  ;;  %4375 = vadd.xlane.f32.xlu0 %v4374_v37  ;;  %v7624_v0 = vpop.eup %5961 }
 0x3b9   : > { %v4253_v20 = vsub.f32 %v7514_v54, %v4169_v35  ;;  %5975 = vpow2.f32 %v4294_v4  ;;  %v4308_v33 = vmul.f32 1.442695, %v4262_v19  ;;  %v4368_v30 = vsel %vm4151_vm1, %v7624_v0, 0.0 }
 0x3ba   : > { %v7627_v10 = vpop.eup %5963  ;;  %v4190_v53 = vpop.xlane.xlu1 %4189 }
 0x3bb   : > { %v4290_v44 = vmul.f32 1.442695, %v4253_v20  ;;  %v4353_v14 = vsel %vm4151_vm1, %v7627_v10, 0.0  ;;  %5977 = vpow2.f32 %v4308_v33  ;;  %v4260_v13 = vsub.f32 %v7512_v9, %v4190_v53 }
 0x3bc   : > { %v4199_v26 = vpop.xlane.xlu0 %4198  ;;  %4354 = vadd.xlane.f32.xlu1 %v4353_v14  ;;  %4369 = vadd.xlane.f32.xlu0 %v4368_v30  ;;  %v7634_v2 = vpop.eup %5965 }
 0x3bd   : > { %v4263_v54 = vsub.f32 %v7520_v52, %v4199_v26  ;;  %5979 = vpow2.f32 %v4290_v44  ;;  %v4304_v56 = vmul.f32 1.442695, %v4260_v13  ;;  %v4347_v24 = vsel %vm4151_vm1, %v7634_v2, 0.0 }
 0x3be   : > { %v7637_v40 = vpop.eup %5967 }
 0x3bf   : > { %v4310_v28 = vmul.f32 1.442695, %v4263_v54  ;;  %v4377_v57 = vsel %vm4151_vm1, %v7637_v40, 0.0  ;;  %5981 = vpow2.f32 %v4304_v56 }
 0x3c0   : > { %v4193_v9 = vpop.xlane.xlu0 %4192  ;;  %v4208_v49 = vpop.xlane.xlu1 %4207  ;;  %4378 = vadd.xlane.f32.xlu1 %v4377_v57  ;;  %4348 = vadd.xlane.f32.xlu0 %v4347_v24 }
 0x3c1   : > { %v4261_v11 = vsub.f32 %v7526_v8, %v4193_v9  ;;  %v4266_v52 = vsub.f32 %v7528_v51, %v4208_v49  ;;  %5983 = vpow2.f32 %v4310_v28 }
 0x3c2   : > { %v7645_v41 = vpop.eup %5969 }
 0x3c3   : > { %v4306_v25 = vmul.f32 1.442695, %v4261_v11  ;;  %v4316_v16 = vmul.f32 1.442695, %v4266_v52  ;;  %v4371_v15 = vsel %vm4151_vm1, %v7645_v41, 0.0  ;;  %v7649_v60 = vpop.eup %5971 }
 0x3c4   : > { %v4202_v46 = vpop.xlane.xlu1 %4201  ;;  %v4211_v43 = vpop.xlane.xlu0 %4210  ;;  %4372 = vadd.xlane.f32.xlu1 %v4371_v15  ;;  %v4362_v35 = vsel %vm4151_vm1, %v7649_v60, 0.0 }
 0x3c5   : > { %v7651_v4 = vpop.eup %5973  ;;  %5985 = vpow2.f32 %v4306_v25  ;;  %v4264_v8 = vsub.f32 %v7534_v22, %v4202_v46  ;;  %v4267_v51 = vsub.f32 %v7538_v45, %v4211_v43 }
 0x3c6   : > { %5987 = vpow2.f32 %v4316_v16  ;;  %v4356_v23 = vsel %vm4151_vm1, %v7651_v4, 0.0  ;;  %v7657_v61 = vpop.eup %5975 }
 0x3c7   : > { %v4312_v37 = vmul.f32 1.442695, %v4264_v8  ;;  %v4318_v19 = vmul.f32 1.442695, %v4267_v51  ;;  %4357 = vadd.xlane.f32.xlu0 %v4356_v23  ;;  %v4365_v53 = vsel %vm4151_vm1, %v7657_v61, 0.0 }
 0x3c8   : > { %v4232_v20 = vpop.xlane.xlu1 %4231  ;;  %v4205_v33 = vpop.xlane.xlu0 %4204  ;;  %4363 = vadd.xlane.f32.xlu1 %v4362_v35 }
 0x3c9   : > { %v7661_v44 = vpop.eup %5977  ;;  %5989 = vpow2.f32 %v4312_v37  ;;  %v4274_v22 = vsub.f32 %v7536_v50, %v4232_v20  ;;  %v4265_v45 = vsub.f32 %v7546_v36, %v4205_v33 }
 0x3ca   : > { %5991 = vpow2.f32 %v4318_v19  ;;  %v7667_v14 = vpop.eup %5979  ;;  %v4386_v26 = vsel %vm4151_vm1, %v7661_v44, 0.0 }
 0x3cb   : > { %v4332_v30 = vmul.f32 1.442695, %v4274_v22  ;;  %v4314_v13 = vmul.f32 1.442695, %v4265_v45  ;;  %4366 = vadd.xlane.f32.xlu0 %v4365_v53  ;;  %v4359_v57 = vsel %vm4151_vm1, %v7667_v14, 0.0 }
 0x3cc   : > { %v4226_v54 = vpop.xlane.xlu1 %4225  ;;  %v4235_v56 = vpop.xlane.xlu0 %4234  ;;  %4387 = vadd.xlane.f32.xlu1 %v4386_v26 }
 0x3cd   : > { %v7671_v28 = vpop.eup %5981  ;;  %5993 = vpow2.f32 %v4332_v30  ;;  %v4272_v50 = vsub.f32 %v7544_v31, %v4226_v54  ;;  %v4275_v36 = vsub.f32 %v7552_v48, %v4235_v56 }
 0x3ce   : > { %5995 = vpow2.f32 %v4314_v13  ;;  %v7677_v24 = vpop.eup %5983  ;;  %v4380_v11 = vsel %vm4151_vm1, %v7671_v28, 0.0 }
 0x3cf   : > { %v4328_v9 = vmul.f32 1.442695, %v4272_v50  ;;  %v4334_v49 = vmul.f32 1.442695, %v4275_v36  ;;  %4360 = vadd.xlane.f32.xlu0 %v4359_v57  ;;  %v4389_v15 = vsel %vm4151_vm1, %v7677_v24, 0.0 }
 0x3d0   : > { %v4229_v52 = vpop.xlane.xlu0 %4228  ;;  %v4220_v25 = vpop.xlane.xlu1 %4219  ;;  %4381 = vadd.xlane.f32.xlu1 %v4380_v11 }
 0x3d1   : > { %5997 = vpow2.f32 %v4328_v9  ;;  %v4273_v31 = vsub.f32 %v7560_v12, %v4229_v52  ;;  %v4270_v48 = vsub.f32 %v7554_v3, %v4220_v25 }
 0x3d2   : > { %v7683_v16 = vpop.eup %5985  ;;  %5999 = vpow2.f32 %v4334_v49 }
 0x3d3   : > { %v7687_v46 = vpop.eup %5987  ;;  %v4330_v43 = vmul.f32 1.442695, %v4273_v31  ;;  %v4324_v8 = vmul.f32 1.442695, %v4270_v48  ;;  %4390 = vadd.xlane.f32.xlu0 %v4389_v15  ;;  %v4383_v35 = vsel %vm4151_vm1, %v7683_v16, 0.0 }
 0x3d4   : > { %v4398_v51 = vsel %vm4151_vm1, %v7687_v46, 0.0  ;;  %v4214_v23 = vpop.xlane.xlu1 %4213  ;;  %v4223_v37 = vpop.xlane.xlu0 %4222 }
 0x3d5   : > { %6001 = vpow2.f32 %v4330_v43  ;;  %4399 = vadd.xlane.f32.xlu1 %v4398_v51  ;;  %v4268_v3 = vsub.f32 %v7562_v59, %v4214_v23  ;;  %v4271_v12 = vsub.f32 %v7570_v62, %v4223_v37 }
 0x3d6   : > { %v7693_v19 = vpop.eup %5989  ;;  %6003 = vpow2.f32 %v4324_v8 }
 0x3d7   : > { %v7697_v20 = vpop.eup %5991  ;;  %v4320_v33 = vmul.f32 1.442695, %v4268_v3  ;;  %v4326_v22 = vmul.f32 1.442695, %v4271_v12  ;;  %4384 = vadd.xlane.f32.xlu0 %v4383_v35  ;;  %v4392_v45 = vsel %vm4151_vm1, %v7693_v19, 0.0 }
 0x3d8   : > { %v4244_v53 = vpop.xlane.xlu1 %4243  ;;  %v4217_v30 = vpop.xlane.xlu0 %4216  ;;  %v4401_v13 = vsel %vm4151_vm1, %v7697_v20, 0.0 }
 0x3d9   : > { %6005 = vpow2.f32 %v4320_v33  ;;  %4393 = vadd.xlane.f32.xlu1 %v4392_v45  ;;  %v4269_v59 = vsub.f32 %v7578_v1, %v4217_v30  ;;  %v4278_v50 = vsub.f32 %v7568_v47, %v4244_v53  ;;  %v2742_v53 = vshrl.u32 %v7986_v27, 16 }
 0x3da   : > { %v7702_v62 = vpop.eup %5993  ;;  %6007 = vpow2.f32 %v4326_v22 }
 0x3db   : > { %v7706_v26 = vpop.eup %5995  ;;  %v4322_v54 = vmul.f32 1.442695, %v4269_v59  ;;  %4402 = vadd.xlane.f32.xlu0 %v4401_v13  ;;  %v4422_v56 = vsel %vm4151_vm1, %v7702_v62, 0.0  ;;  %v4340_v31 = vmul.f32 1.442695, %v4278_v50 }
 0x3dc   : > { %v4238_v36 = vpop.xlane.xlu1 %4237  ;;  %v4247_v57 = vpop.xlane.xlu0 %4246  ;;  %v4395_v11 = vsel %vm4151_vm1, %v7706_v26, 0.0 }
 0x3dd   : > { %4423 = vadd.xlane.f32.xlu1 %v4422_v56  ;;  %v4276_v1 = vsub.f32 %v7576_v63, %v4238_v36  ;;  %6009 = vpow2.f32 %v4322_v54  ;;  %v4279_v49 = vsub.f32 %v7584_v55, %v4247_v57 }
 0x3de   : > { %v7712_v9 = vpop.eup %5997 }
 0x3df   : > { %v7717_v52 = vpop.eup %5999  ;;  %v4336_v25 = vmul.f32 1.442695, %v4276_v1  ;;  %4396 = vadd.xlane.f32.xlu0 %v4395_v11  ;;  %v4416_v47 = vsel %vm4151_vm1, %v7712_v9, 0.0  ;;  %v4342_v55 = vmul.f32 1.442695, %v4279_v49 }
 0x3e0   : > { %v2723_v48 = vpop.permute.xlu1 %2722  ;;  %v4241_v15 = vpop.xlane.xlu0 %4240  ;;  %v4425_v8 = vsel %vm4151_vm1, %v7717_v52, 0.0 }
 0x3e1   : > { %6011 = vpow2.f32 %v4336_v25  ;;  %4417 = vadd.xlane.f32.xlu1 %v4416_v47  ;;  %v4277_v63 = vsub.f32 %v7590_v42, %v4241_v15  ;;  %v2750_v37 = vshrl.u32 %v2723_v48, 16 }
 0x3e2   : > { %v7722_v43 = vpop.eup %6001  ;;  %6013 = vpow2.f32 %v4340_v31 }
 0x3e3   : > { %v7726_v51 = vpop.eup %6003  ;;  %v4338_v23 = vmul.f32 1.442695, %v4277_v63  ;;  %4426 = vadd.xlane.f32.xlu0 %v4425_v8  ;;  %v4419_v59 = vsel %vm4151_vm1, %v7722_v43, 0.0 }
 0x3e4   : > { %v4410_v3 = vsel %vm4151_vm1, %v7726_v51, 0.0  ;;  %v2731_v12 = vpop.permute.xlu1 %2730  ;;  %v2715_v35 = vpop.permute.xlu0 %2714 }
 0x3e5   : > { %6015 = vpow2.f32 %v4338_v23  ;;  %4411 = vadd.xlane.f32.xlu1 %v4410_v3  ;;  %v2748_v42 = vpack.i.b16 %v2731_v12, %v2723_v48  ;;  %v2751_v33 = vshrl.u32 %v2731_v12, 16  ;;  %v2740_v22 = vpack.i.b16 %v2715_v35, %v7986_v27 }
 0x3e6   : > { %v7731_v45 = vpop.eup %6005  ;;  %6017 = vpow2.f32 %v4342_v55  ;;  %v2743_v30 = vshrl.u32 %v2715_v35, 16 }
 0x3e7   : > { %v7736_v13 = vpop.eup %6007  ;;  %v2752_v54 = vpack.i.b16 %v2751_v33, %v2750_v37  ;;  %v2817_v56 = vcombine.high %v2748_v42, %v6492_v6  ;;  %v2824_v50 = vrot.slane %v2748_v42, %v6497_v18  ;;  %v2802_v36 = vcombine.high %v2740_v22, %v6492_v6  ;;  %4420 = vadd.xlane.f32.xlu0 %v4419_v59 }
 0x3e8   : > { %v2744_v57 = vpack.i.b16 %v2743_v30, %v2742_v53  ;;  %v2809_v1 = vrot.slane %v2740_v22, %v6497_v18  ;;  %v4404_v27 = vsel %vm4151_vm1, %v7731_v45, 0.0  ;;  %v4413_v49 = vsel %vm4151_vm1, %v7736_v13, 0.0 }
 0x3e9   : > { %v2831_v11 = vrot.slane %v2817_v56, %v6497_v18  ;;  %v2883_v25 = vcombine.high %v2752_v54, %v6492_v6  ;;  %v2890_v47 = vrot.slane %v2752_v54, %v6497_v18  ;;  %v2816_v31 = vrot.slane %v2802_v36, %v6497_v18  ;;  %4405 = vadd.xlane.f32.xlu1 %v4404_v27 }
 0x3ea   : > { %v2832_v48 = vcombine.low %v2809_v1, %v2824_v50  ;;  %v2833_v15 = vcombine.high %v2809_v1, %v2824_v50  ;;  %v2868_v63 = vcombine.high %v2744_v57, %v6492_v6  ;;  %v2875_v55 = vrot.slane %v2744_v57, %v6497_v18  ;;  %v7752_v8 = vpop.eup %6009 }
 0x3eb   : > { %v2897_v23 = vrot.slane %v2883_v25, %v6497_v18  ;;  %v2848_v37 = vcombine.low %v2816_v31, %v2831_v11  ;;  %v2849_v3 = vcombine.high %v2816_v31, %v2831_v11  ;;  %4414 = vadd.xlane.f32.xlu0 %v4413_v49  ;;  %v4407_v30 = vsel %vm4151_vm1, %v7752_v8, 0.0 }
 0x3ec   : > { %v2840_v12 = vrot.slane %v2832_v48, %v6507_v29  ;;  %v2847_v35 = vrot.slane %v2833_v15, %v6507_v29  ;;  %v2882_v42 = vrot.slane %v2868_v63, %v6497_v18  ;;  %v2898_v33 = vcombine.low %v2875_v55, %v2890_v47 }
 0x3ed   : > { %v2856_v22 = vrot.slane %v2848_v37, %v6507_v29  ;;  %v2863_v6 = vrot.slane %v2849_v3, %v6507_v29  ;;  %v2899_v53 = vcombine.high %v2875_v55, %v2890_v47 }
 0x3ee   : > { %v7762_v59 = vpop.eup %6011  ;;  %v2906_v54 = vrot.slane %v2898_v33, %v6507_v29  ;;  %v2914_v56 = vcombine.low %v2882_v42, %v2897_v23  ;;  %v2915_v50 = vcombine.high %v2882_v42, %v2897_v23  ;;  %v3330_v36 = vcombine.low %v2840_v12, %v2847_v35 }
 0x3ef   : > { %v2913_v57 = vrot.slane %v2899_v53, %v6507_v29  ;;  %v5438_v1 = vcombine.high %v2840_v12, %v2847_v35  ;;  %v3346_v27 = vcombine.low %v2856_v22, %v2863_v6  ;;  %v5439_v49 = vcombine.high %v2856_v22, %v2863_v6  ;;  %4408 = vadd.xlane.f32.xlu0 %v4407_v30  ;;  %v7771_v48 = vpop.eup %6013 }
 0x3f0   : > { %v2922_v11 = vrot.slane %v2914_v56, %v6507_v29  ;;  %v2929_v25 = vrot.slane %v2915_v50, %v6507_v29  ;;  %v3337_v47 = vrot.slane %v3330_v36, %v6497_v18  ;;  %v4428_v31 = vsel %vm4151_vm1, %v7762_v59, 0.0 }
 0x3f1   : > { %v3345_v15 = vrot.slane %v5438_v1, %v6497_v18  ;;  %v3380_v63 = vcombine.low %v2906_v54, %v2913_v57  ;;  %v5440_v55 = vcombine.high %v2906_v54, %v2913_v57  ;;  %4429 = vadd.xlane.f32.xlu1 %v4428_v31  ;;  %v3353_v12 = vrot.slane %v3346_v27, %v6497_v18 }
 0x3f2   : > { %v7774_v23 = vpop.eup %6015  ;;  %v3396_v37 = vcombine.low %v2922_v11, %v2929_v25  ;;  %v5441_v3 = vcombine.high %v2922_v11, %v2929_v25  ;;  %v3361_v35 = vrot.slane %v5439_v49, %v6497_v18  ;;  %v4434_v30 = vsel %vm4151_vm1, %v7771_v48, 0.0 }
 0x3f3   : > { %v7778_v42 = vpop.eup %6017  ;;  %v4431_v33 = vsel %vm4151_vm1, %v7774_v23, 0.0  ;;  %v3362_v22 = vcombine.low %v3337_v47, %v3345_v15  ;;  %v3387_v6 = vrot.slane %v3380_v63, %v6497_v18  ;;  %v3395_v53 = vrot.slane %v5440_v55, %v6497_v18 }
 0x3f4   : > { %4432 = vadd.xlane.f32.xlu0 %v4431_v33  ;;  %v3370_v54 = vcombine.low %v3353_v12, %v3361_v35  ;;  %v3403_v56 = vrot.slane %v3396_v37, %v6497_v18  ;;  %v3411_v50 = vrot.slane %v5441_v3, %v6497_v18  ;;  %v4437_v49 = vsel %vm4151_vm1, %v7778_v42, 0.0 }
 0x3f5   : > { %4435 = vadd.xlane.f32.xlu1 %v4434_v30  ;;  %v3412_v36 = vcombine.low %v3387_v6, %v3395_v53  ;;  %v3369_v57 = vrot.slane %v3362_v22, %v6507_v29 }
 0x3f6   : > { %v3377_v1 = vrot.slane %v3370_v54, %v6507_v29  ;;  %v3420_v27 = vcombine.low %v3403_v56, %v3411_v50 }
 0x3f7   : > { %v3419_v25 = vrot.slane %v3412_v36, %v6507_v29 }
 0x3f8   : > { %4438 = vadd.xlane.f32.xlu0 %v4437_v49  ;;  %v3378_v11 = vcombine.low %v3369_v57, %v3377_v1  ;;  %v3427_v47 = vrot.slane %v3420_v27, %v6507_v29  ;;  %v3379_v31 = vcombine.high %v3369_v57, %v3377_v1 }
 0x3fa   : > { %v3428_v15 = vcombine.low %v3419_v25, %v3427_v47  ;;  %v3429_v63 = vcombine.high %v3419_v25, %v3427_v47  ;;  %v3734_v18 = vshrl.u32 %v3378_v11, 16  ;;  %v3742_v55 = vshrl.u32 %v3379_v31, 16 }
 0x3fc   : > { %v3732_v37 = vpack.i.b16 %v3428_v15, %v3378_v11  ;;  %v3735_v3 = vshrl.u32 %v3428_v15, 16  ;;  %v7794_v12 = vpack.i.b16 %v3429_v63, %v3379_v31  ;;  %v3743_v35 = vshrl.u32 %v3429_v63, 16 }
 0x3fe   : > { %5712 = vmatprep.subr.bf16.mxu0 %v3732_v37  ;;  %v3736_v33 = vpack.i.b16 %v3735_v3, %v3734_v18  ;;  %v7796_v22 = vpack.i.b16 %v3743_v35, %v3742_v55 }
 0x3ff   : > { %5713 = vmatpush3.bf16.msra.mxu0 %v3732_v37 }
 0x400   : > { %5728 = vmatprep.subr.bf16.mxu1 %v3736_v33  ;;  %5738 = vmatprep.subr.bf16.mxu0 %v7454_v32 }
 0x401   : > { %5729 = vmatpush3.bf16.msra.mxu1 %v3736_v33 }
 0x402   : > { %5754 = vmatprep.subr.bf16.mxu1 %v7458_v58 }
 0x43d   : > { %v4352_v29 = vpop.xlane.xlu0 %4351 }
 0x43e   : > { %6019 = vrcp.f32 %v4352_v29 }
 0x441   : > { %v4346_v6 = vpop.xlane.xlu1 %4345  ;;  %v4376_v53 = vpop.xlane.xlu0 %4375 }
 0x445   : > { %v4355_v30 = vpop.xlane.xlu1 %4354  ;;  %v4370_v54 = vpop.xlane.xlu0 %4369 }
 0x446   : > { %6021 = vrcp.f32 %v4355_v30 }
 0x447   : > { %6023 = vrcp.f32 %v4346_v6 }
 0x449   : > { %v4379_v56 = vpop.xlane.xlu1 %4378  ;;  %v4349_v50 = vpop.xlane.xlu0 %4348 }
 0x44a   : > { %6025 = vrcp.f32 %v4379_v56 }
 0x44b   : > { %6027 = vrcp.f32 %v4349_v50  ;;  %v6020_v27 = vpop.eup %6019 }
 0x44c   : > { %6029 = vrcp.f32 %v4370_v54  ;;  %v4474_v29 = vmul.f32 %v6020_v27, %v7609_v39 }
 0x44d   : > { %6031 = vrcp.f32 %v4376_v53  ;;  %v4373_v36 = vpop.xlane.xlu1 %4372 }
 0x44e   : > { %6033 = vrcp.f32 %v4373_v36 }
 0x450   : > { %v4358_v57 = vpop.xlane.xlu0 %4357 }
 0x451   : > { %v4364_v1 = vpop.xlane.xlu1 %4363 }
 0x453   : > { %v6022_v11 = vpop.eup %6021 }
 0x454   : > { %v4367_v49 = vpop.xlane.xlu0 %4366  ;;  %v6024_v47 = vpop.eup %6023  ;;  %v4475_v63 = vmul.f32 %v6022_v11, %v7627_v10 }
 0x455   : > { %v4388_v25 = vpop.xlane.xlu1 %4387  ;;  %6035 = vrcp.f32 %v4367_v49  ;;  %v4472_v3 = vmul.f32 %v6024_v47, %v7617_v38 }
 0x456   : > { %6037 = vrcp.f32 %v4358_v57  ;;  %v4505_v54 = vpack.c.bf16 %v4475_v63, %v4474_v29 }
 0x457   : > { %v6026_v31 = vpop.eup %6025  ;;  %6039 = vrcp.f32 %v4364_v1 }
 0x458   : > { %v6028_v15 = vpop.eup %6027  ;;  %v4361_v18 = vpop.xlane.xlu0 %4360  ;;  %v4483_v53 = vmul.f32 %v6026_v31, %v7637_v40 }
 0x459   : > { %v6030_v55 = vpop.eup %6029  ;;  %6041 = vrcp.f32 %v4361_v18  ;;  %v4382_v37 = vpop.xlane.xlu1 %4381  ;;  %v4473_v35 = vmul.f32 %v6028_v15, %v7634_v2 }
 0x45a   : > { %v6032_v33 = vpop.eup %6031  ;;  %v4480_v10 = vmul.f32 %v6030_v55, %v7624_v0 }
 0x45b   : > { %v6034_v6 = vpop.eup %6033  ;;  %v4504_v30 = vpack.c.bf16 %v4473_v35, %v4472_v3  ;;  %v4482_v36 = vmul.f32 %v6032_v33, %v7614_v5 }
 0x45c   : > { %v4391_v56 = vpop.xlane.xlu0 %4390  ;;  %v4481_v50 = vmul.f32 %v6034_v6, %v7645_v41 }
 0x45d   : > { %5714 = vmatprep.mubr.msk.bf16.mxu0 %vm4151_vm1, %v4504_v30  ;;  %6043 = vrcp.f32 %v4391_v56  ;;  %v4509_v39 = vpack.c.bf16 %v4483_v53, %v4482_v36 }
 0x45e   : > { %v4400_v38 = vpop.xlane.xlu1 %4399  ;;  %5715 = vmatmul.mubr.msk.bf16.vlgmr.msra.gmra.mxu0 %vm4151_vm1, %v4505_v54  ;;  %v4508_v2 = vpack.c.bf16 %v4481_v50, %v4480_v10  ;;  %6045 = vrcp.f32 %v4382_v37 }
 0x45f   : > { %5739 = vmatpush3.bf16.msra.mxu0 %v7454_v32  ;;  %6047 = vrcp.f32 %v4388_v25 }
 0x460   : > { %5740 = vmatprep.subr.bf16.mxu0 %v7456_v7  ;;  %v4385_v40 = vpop.xlane.xlu0 %4384  ;;  %5730 = vmatprep.mubr.msk.bf16.mxu1 %vm4151_vm1, %v4508_v2 }
 0x461   : > { %6049 = vrcp.f32 %v4385_v40  ;;  %5731 = vmatmul.mubr.msk.bf16.vlgmr.msra.gmra.mxu1 %vm4151_vm1, %v4509_v39 }
 0x462   : > { %v4394_v5 = vpop.xlane.xlu1 %4393  ;;  %5755 = vmatpush3.bf16.msra.mxu1 %v7458_v58  ;;  %v6036_v0 = vpop.eup %6035 }
 0x463   : > { %5741 = vmatpush3.bf16.msra.mxu0 %v7456_v7  ;;  %5756 = vmatprep.subr.bf16.mxu1 %v7462_v34  ;;  %v6038_v41 = vpop.eup %6037  ;;  %v4479_v49 = vmul.f32 %v6036_v0, %v7657_v61 }
 0x464   : > { %5742 = vmatprep.subr.bf16.mxu0 %v7460_v17  ;;  %v4403_v32 = vpop.xlane.xlu0 %4402  ;;  %v6040_v57 = vpop.eup %6039  ;;  %v4476_v7 = vmul.f32 %v6038_v41, %v7651_v4 }
 0x465   : > { %6051 = vrcp.f32 %v4403_v32  ;;  %v4478_v25 = vmul.f32 %v6040_v57, %v7649_v60 }
 0x466   : > { %v6042_v1 = vpop.eup %6041  ;;  %v4424_v27 = vpop.xlane.xlu1 %4423  ;;  %5757 = vmatpush3.bf16.msra.mxu1 %v7462_v34  ;;  %6053 = vrcp.f32 %v4394_v5 }
 0x467   : > { %5743 = vmatpush3.bf16.msra.mxu0 %v7460_v17  ;;  %5758 = vmatprep.subr.bf16.mxu1 %v7464_v21  ;;  %v4477_v58 = vmul.f32 %v6042_v1, %v7667_v14  ;;  %6055 = vrcp.f32 %v4400_v38  ;;  %v4507_v61 = vpack.c.bf16 %v4479_v49, %v4478_v25 }
 0x468   : > { %5744 = vmatprep.subr.bf16.mxu0 %v7794_v12  ;;  %v4397_v11 = vpop.xlane.xlu0 %4396 }
 0x469   : > { %6057 = vrcp.f32 %v4397_v11  ;;  %v4506_v47 = vpack.c.bf16 %v4477_v58, %v4476_v7 }
 0x46a   : > { %v4418_v34 = vpop.xlane.xlu1 %4417  ;;  %5759 = vmatpush3.bf16.msra.mxu1 %v7464_v21  ;;  %v6044_v31 = vpop.eup %6043 }
 0x46b   : > { %5745 = vmatpush3.bf16.msra.mxu0 %v7794_v12  ;;  %5718 = vmatprep.mubr.msk.bf16.mxu0 %vm4151_vm1, %v4506_v47  ;;  %v6046_v17 = vpop.eup %6045  ;;  %v4487_v21 = vmul.f32 %v6044_v31, %v7677_v24  ;;  %v5947_v31 = vld [vmem:[#allocation7 + $0x8] sm:$0xff]  }
 0x46c   : > { %5760 = vmatprep.subr.bf16.mxu1 %v7796_v22  ;;  %5719 = vmatmul.mubr.msk.bf16.gmra.mxu0 %vm4151_vm1, %v4507_v61  ;;  %v4427_v4 = vpop.xlane.xlu0 %4426  ;;  %v6048_v14 = vpop.eup %6047  ;;  %v4484_v63 = vmul.f32 %v6046_v17, %v7671_v28  ;;  %v5948_v17 = vld [vmem:[#allocation7] sm:$0xff]  }
 0x46d   : > { %6059 = vrcp.f32 %v4427_v4  ;;  %v4486_v55 = vmul.f32 %v6048_v14, %v7661_v44  ;;  %5770 = vmatprep.subr.bf16.mxu0 %v5947_v31  ;;  %v5949_v4 = vld [vmem:[#allocation7 + $0x18] sm:$0xff]  }
 0x46e   : > { %v6050_v15 = vpop.eup %6049  ;;  %v4412_v60 = vpop.xlane.xlu1 %4411  ;;  %5761 = vmatpush3.bf16.msra.mxu1 %v7796_v22  ;;  %6061 = vrcp.f32 %v4418_v34 }
 0x46f   : > { %v4485_v12 = vmul.f32 %v6050_v15, %v7683_v16  ;;  %6063 = vrcp.f32 %v4424_v27  ;;  %v4511_v3 = vpack.c.bf16 %v4487_v21, %v4486_v55  ;;  %5782 = vmatprep.subr.bf16.mxu1 %v5949_v4 }
 0x470   : > { %v4421_v18 = vpop.xlane.xlu0 %4420 }
 0x471   : > { %6065 = vrcp.f32 %v4421_v18  ;;  %v4510_v37 = vpack.c.bf16 %v4485_v12, %v4484_v63 }
 0x472   : > { %v6052_v35 = vpop.eup %6051  ;;  %v4406_v29 = vpop.xlane.xlu1 %4405 }
 0x473   : > { %5734 = vmatprep.mubr.msk.bf16.mxu1 %vm4151_vm1, %v4510_v37  ;;  %v6054_v33 = vpop.eup %6053  ;;  %v4491_v28 = vmul.f32 %v6052_v35, %v7697_v20  ;;  %v5952_v37 = vld [vmem:[#allocation7 + $0x20] sm:$0xff]  }
 0x474   : > { %5735 = vmatmul.mubr.msk.bf16.gmra.mxu1 %vm4151_vm1, %v4511_v3  ;;  %v4415_v24 = vpop.xlane.xlu0 %4414  ;;  %v6056_v22 = vpop.eup %6055  ;;  %v4488_v16 = vmul.f32 %v6054_v33, %v7693_v19 }
 0x475   : > { %6067 = vrcp.f32 %v4415_v24  ;;  %v4490_v53 = vmul.f32 %v6056_v22, %v7687_v46 }
 0x476   : > { %v6058_v6 = vpop.eup %6057  ;;  %6069 = vrcp.f32 %v4406_v29  ;;  %v5954_v29 = vld [vmem:[#allocation7 + $0x30] sm:$0xff]  }
 0x477   : > { %v4489_v44 = vmul.f32 %v6058_v6, %v7706_v26  ;;  %6071 = vrcp.f32 %v4412_v60  ;;  %v4513_v56 = vpack.c.bf16 %v4491_v28, %v4490_v53 }
 0x478   : > { %v4409_v30 = vpop.xlane.xlu0 %4408 }
 0x479   : > { %6073 = vrcp.f32 %v4409_v30  ;;  %v4512_v54 = vpack.c.bf16 %v4489_v44, %v4488_v16 }
 0x47a   : > { %v4430_v10 = vpop.xlane.xlu1 %4429  ;;  %v6060_v50 = vpop.eup %6059 }
 0x47b   : > { %5746 = vmatprep.mubr.msk.bf16.mxu0 %vm4151_vm1, %v4512_v54  ;;  %v6062_v36 = vpop.eup %6061  ;;  %6075 = vrcp.f32 %v4430_v10  ;;  %v4499_v26 = vmul.f32 %v6060_v50, %v7717_v52 }
 0x47c   : > { %5747 = vmatmul.mubr.msk.bf16.vlgmr.msra.gmra.mxu0 %vm4151_vm1, %v4513_v56  ;;  %v6064_v20 = vpop.eup %6063  ;;  %v4496_v46 = vmul.f32 %v6062_v36, %v7712_v9 }
 0x47d   : > { %v4433_v38 = vpop.xlane.xlu0 %4432  ;;  %v4498_v40 = vmul.f32 %v6064_v20, %v7702_v62  ;;  %5771 = vmatpush3.bf16.msra.mxu0 %v5947_v31 }
 0x47e   : > { %v6066_v19 = vpop.eup %6065  ;;  %v4436_v2 = vpop.xlane.xlu1 %4435  ;;  %6077 = vrcp.f32 %v4433_v38  ;;  %5772 = vmatprep.subr.bf16.mxu0 %v5948_v17 }
 0x47f   : > { %v4497_v39 = vmul.f32 %v6066_v19, %v7722_v43  ;;  %6079 = vrcp.f32 %v4436_v2  ;;  %v4517_v41 = vpack.c.bf16 %v4499_v26, %v4498_v40 }
 0x481   : > { %v4439_v5 = vpop.xlane.xlu0 %4438  ;;  %v4516_v0 = vpack.c.bf16 %v4497_v39, %v4496_v46  ;;  %5773 = vmatpush3.bf16.msra.mxu0 %v5948_v17 }
 0x482   : > { %6081 = vrcp.f32 %v4439_v5  ;;  %v6068_v32 = vpop.eup %6067 }
 0x483   : > { %5762 = vmatprep.mubr.msk.bf16.mxu1 %vm4151_vm1, %v4516_v0  ;;  %v6070_v57 = vpop.eup %6069  ;;  %v4495_v27 = vmul.f32 %v6068_v32, %v7736_v13 }
 0x484   : > { %5763 = vmatmul.mubr.msk.bf16.vlgmr.msra.gmra.mxu1 %vm4151_vm1, %v4517_v41  ;;  %v6072_v52 = vpop.eup %6071  ;;  %v4492_v9 = vmul.f32 %v6070_v57, %v7731_v45 }
 0x485   : > { %v4494_v62 = vmul.f32 %v6072_v52, %v7726_v51  ;;  %5783 = vmatpush3.bf16.msra.mxu1 %v5949_v4 }
 0x486   : > { %v6074_v1 = vpop.eup %6073 }
 0x487   : > { %v4493_v43 = vmul.f32 %v6074_v1, %v7752_v8  ;;  %v4515_v58 = vpack.c.bf16 %v4495_v27, %v4494_v62 }
 0x488   : > { %v6076_v49 = vpop.eup %6075 }
 0x489   : > { %v4514_v7 = vpack.c.bf16 %v4493_v43, %v4492_v9  ;;  %v4500_v25 = vmul.f32 %v6076_v49, %v7762_v59  ;;  %v5950_v59 = vld [vmem:[#allocation7 + $0x10] sm:$0xff]  }
 0x48a   : > { %5784 = vmatprep.subr.bf16.mxu1 %v5950_v59 }
 0x48b   : > { %v6078_v11 = vpop.eup %6077  ;;  %5750 = vmatprep.mubr.msk.bf16.mxu0 %vm4151_vm1, %v4514_v7  ;;  %5785 = vmatpush3.bf16.msra.mxu1 %v5950_v59 }
 0x48c   : > { %5751 = vmatmul.mubr.msk.bf16.gmra.mxu0 %vm4151_vm1, %v4515_v58  ;;  %v4501_v47 = vmul.f32 %v6078_v11, %v7774_v23  ;;  %v6080_v34 = vpop.eup %6079  ;;  %v5951_v23 = vld [vmem:[#allocation7 + $0x28] sm:$0xff]  }
 0x48d   : > { %v4502_v45 = vmul.f32 %v6080_v34, %v7771_v48  ;;  %5794 = vmatprep.subr.bf16.mxu0 %v5951_v23  ;;  %v5953_v48 = vld [vmem:[#allocation7 + $0x38] sm:$0xff]  }
 0x48e   : > { %v4518_v13 = vpack.c.bf16 %v4501_v47, %v4500_v25  ;;  %5806 = vmatprep.subr.bf16.mxu1 %v5953_v48 }
 0x48f   : > { %v6082_v61 = vpop.eup %6081 }
 0x490   : > { %5766 = vmatprep.mubr.msk.bf16.mxu1 %vm4151_vm1, %v4518_v13  ;;  %v4503_v51 = vmul.f32 %v6082_v61, %v7778_v42 }
 0x492   : > { %v4519_v8 = vpack.c.bf16 %v4503_v51, %v4502_v45 }
 0x494   : > { %5767 = vmatmul.mubr.msk.bf16.gmra.mxu1 %vm4151_vm1, %v4519_v8 }
 0x51e   : > { %v5716_v42 = vpop.f32.mrf.mxu0 }
 0x520   : > { %v4566_v14 = vpop.f32.mrf.mxu0 }
 0x521   : > { %v5732_v15 = vpop.f32.mrf.mxu1 }
 0x522   : > { %v5717_v60 = vpop.f32.mrf.mxu0 }
 0x523   : > { %v4643_v21 = vpop.f32.mrf.mxu1  ;;  %v4829_v55 = vpack.c.bf16 %v5717_v60, %v5716_v42 }
 0x524   : > { %v4569_v63 = vpop.f32.mrf.mxu0 }
 0x525   : > { %v4828_v12 = vpack.c.bf16 %v4569_v63, %v4566_v14  ;;  %v5733_v18 = vpop.f32.mrf.mxu1 }
 0x526   : > { %v4833_v33 = vpack.c.bf16 %v5733_v18, %v5732_v15 }
 0x527   : > { %5774 = vmatprep.mubr.msk.bf16.mxu0 %vm3794_vm0, %v4828_v12  ;;  %v4646_v3 = vpop.f32.mrf.mxu1 }
 0x528   : > { %v4832_v35 = vpack.c.bf16 %v4646_v3, %v4643_v21  ;;  %5775 = vmatmul.mubr.msk.bf16.vlgmr.msra.gmra.mxu0 %vm3794_vm0, %v4829_v55 }
 0x529   : > { %5795 = vmatpush3.bf16.msra.mxu0 %v5951_v23 }
 0x52a   : > { %5786 = vmatprep.mubr.msk.bf16.mxu1 %vm3794_vm0, %v4832_v35  ;;  %5796 = vmatprep.subr.bf16.mxu0 %v5952_v37 }
 0x52b   : > { %5787 = vmatmul.mubr.msk.bf16.vlgmr.msra.gmra.mxu1 %vm3794_vm0, %v4833_v33 }
 0x52c   : > { %v5720_v24 = vpop.f32.mrf.mxu0  ;;  %5807 = vmatpush3.bf16.msra.mxu1 %v5953_v48 }
 0x52d   : > { %5797 = vmatpush3.bf16.msra.mxu0 %v5952_v37  ;;  %5808 = vmatprep.subr.bf16.mxu1 %v5954_v29  ;;  %v5510_v37 = vld [vmem:[%s7946_s3] ss:$0 sm:$0xff] }
 0x52e   : > { %v4582_v22 = vpop.f32.mrf.mxu0 }
 0x530   : > { %v5721_v6 = vpop.f32.mrf.mxu0  ;;  %5809 = vmatpush3.bf16.msra.mxu1 %v5954_v29 }
 0x531   : > { %v4831_v44 = vpack.c.bf16 %v5721_v6, %v5720_v24 }
 0x532   : > { %v4585_v28 = vpop.f32.mrf.mxu0 }
 0x533   : > { %v4830_v16 = vpack.c.bf16 %v4585_v28, %v4582_v22 }
 0x534   : > { %v5736_v53 = vpop.f32.mrf.mxu1 }
 0x535   : > { %5778 = vmatprep.mubr.msk.bf16.mxu0 %vm3794_vm0, %v4830_v16 }
 0x536   : > { %v4659_v30 = vpop.f32.mrf.mxu1  ;;  %5779 = vmatmul.mubr.msk.bf16.gmra.mxu0 %vm3794_vm0, %v4831_v44 }
 0x538   : > { %v5737_v54 = vpop.f32.mrf.mxu1 }
 0x539   : > { %v4835_v50 = vpack.c.bf16 %v5737_v54, %v5736_v53 }
 0x53a   : > { %v4662_v56 = vpop.f32.mrf.mxu1 }
 0x53b   : > { %v4834_v10 = vpack.c.bf16 %v4662_v56, %v4659_v30 }
 0x53c   : > { %v5748_v36 = vpop.f32.mrf.mxu0 }
 0x53d   : > { %5790 = vmatprep.mubr.msk.bf16.mxu1 %vm3794_vm0, %v4834_v10 }
 0x53e   : > { %v4720_v20 = vpop.f32.mrf.mxu0  ;;  %5791 = vmatmul.mubr.msk.bf16.gmra.mxu1 %vm3794_vm0, %v4835_v50 }
 0x540   : > { %v5749_v38 = vpop.f32.mrf.mxu0 }
 0x541   : > { %v4837_v2 = vpack.c.bf16 %v5749_v38, %v5748_v36 }
 0x542   : > { %v4723_v19 = vpop.f32.mrf.mxu0 }
 0x543   : > { %v4836_v26 = vpack.c.bf16 %v4723_v19, %v4720_v20 }
 0x544   : > { %v5764_v46 = vpop.f32.mrf.mxu1 }
 0x545   : > { %5798 = vmatprep.mubr.msk.bf16.mxu0 %vm3794_vm0, %v4836_v26 }
 0x546   : > { %v4797_v39 = vpop.f32.mrf.mxu1  ;;  %5799 = vmatmul.mubr.msk.bf16.vlgmr.msra.gmra.mxu0 %vm3794_vm0, %v4837_v2 }
 0x548   : > { %v5765_v40 = vpop.f32.mrf.mxu1 }
 0x549   : > { %v4841_v41 = vpack.c.bf16 %v5765_v40, %v5764_v46 }
 0x54a   : > { %v4800_v5 = vpop.f32.mrf.mxu1 }
 0x54b   : > { %v4840_v0 = vpack.c.bf16 %v4800_v5, %v4797_v39 }
 0x54c   : > { %v5752_v32 = vpop.f32.mrf.mxu0 }
 0x54d   : > { %5810 = vmatprep.mubr.msk.bf16.mxu1 %vm3794_vm0, %v4840_v0 }
 0x54e   : > { %v4736_v57 = vpop.f32.mrf.mxu0  ;;  %5811 = vmatmul.mubr.msk.bf16.vlgmr.msra.gmra.mxu1 %vm3794_vm0, %v4841_v41 }
 0x550   : > { %v5753_v52 = vpop.f32.mrf.mxu0 }
 0x551   : > { %v4839_v9 = vpack.c.bf16 %v5753_v52, %v5752_v32 }
 0x552   : > { %v4739_v1 = vpop.f32.mrf.mxu0 }
 0x553   : > { %v4838_v27 = vpack.c.bf16 %v4739_v1, %v4736_v57 }
 0x554   : > { %v5768_v43 = vpop.f32.mrf.mxu1 }
 0x555   : > { %5802 = vmatprep.mubr.msk.bf16.mxu0 %vm3794_vm0, %v4838_v27 }
 0x556   : > { %5803 = vmatmul.mubr.msk.bf16.gmra.mxu0 %vm3794_vm0, %v4839_v9  ;;  %v4813_v62 = vpop.f32.mrf.mxu1 }
 0x558   : > { %v5769_v49 = vpop.f32.mrf.mxu1 }
 0x559   : > { %v4843_v11 = vpack.c.bf16 %v5769_v49, %v5768_v43 }
 0x55a   : > { %v4816_v7 = vpop.f32.mrf.mxu1 }
 0x55b   : > { %v4842_v58 = vpack.c.bf16 %v4816_v7, %v4813_v62 }
 0x55d   : > { %5814 = vmatprep.mubr.msk.bf16.mxu1 %vm3794_vm0, %v4842_v58 }
 0x55e   : > { %5815 = vmatmul.mubr.msk.bf16.gmra.mxu1 %vm3794_vm0, %v4843_v11 }
 0x5e8   : > { %v5776_v25 = vpop.f32.mrf.mxu0 }
 0x5ea   : > { %v4918_v47 = vpop.f32.mrf.mxu0 }
 0x5eb   : > { %v5788_v13 = vpop.f32.mrf.mxu1 }
 0x5ec   : > { %v5777_v34 = vpop.f32.mrf.mxu0  ;;  %v5218_v60 = vadd.f32 %v5788_v13, %v5776_v25 }
 0x5ed   : > { %v5007_v45 = vpop.f32.mrf.mxu1 }
 0x5ee   : > { %v4921_v61 = vpop.f32.mrf.mxu0  ;;  %v5216_v12 = vadd.f32 %v5007_v45, %v4918_v47 }
 0x5ef   : > { %v5789_v8 = vpop.f32.mrf.mxu1 }
 0x5f0   : > { %v5219_v3 = vadd.f32 %v5789_v8, %v5777_v34 }
 0x5f1   : > { %v5010_v17 = vpop.f32.mrf.mxu1 }
 0x5f2   : > { %v5217_v22 = vadd.f32 %v5010_v17, %v4921_v61 }
 0x5f6   : > { %v5780_v51 = vpop.f32.mrf.mxu0 }
 0x5f8   : > { %v4934_v31 = vpop.f32.mrf.mxu0 }
 0x5fa   : > { %v5781_v4 = vpop.f32.mrf.mxu0 }
 0x5fc   : > { %v4937_v23 = vpop.f32.mrf.mxu0 }
 0x5fe   : > { %v5792_v59 = vpop.f32.mrf.mxu1 }
 0x5ff   : > { %v5222_v19 = vadd.f32 %v5792_v59, %v5780_v51 }
 0x600   : > { %v5023_v48 = vpop.f32.mrf.mxu1 }
 0x601   : > { %v5220_v2 = vadd.f32 %v5023_v48, %v4934_v31 }
 0x602   : > { %v5793_v14 = vpop.f32.mrf.mxu1 }
 0x603   : > { %v5223_v40 = vadd.f32 %v5793_v14, %v5781_v4 }
 0x604   : > { %v5026_v21 = vpop.f32.mrf.mxu1 }
 0x605   : > { %v5221_v57 = vadd.f32 %v5026_v21, %v4937_v23 }
 0x606   : > { %v5800_v42 = vpop.f32.mrf.mxu0 }
 0x607   : > { %v5226_v18 = vadd.f32 %v5800_v42, %v5218_v60 }
 0x608   : > { %v5096_v15 = vpop.f32.mrf.mxu0 }
 0x609   : > { %v5224_v35 = vadd.f32 %v5216_v12, %v5096_v15 }
 0x60a   : > { %v5801_v63 = vpop.f32.mrf.mxu0 }
 0x60b   : > { %v5227_v6 = vadd.f32 %v5801_v63, %v5219_v3 }
 0x60c   : > { %v5099_v29 = vpop.f32.mrf.mxu0 }
 0x60d   : > { %v5225_v53 = vadd.f32 %v5217_v22, %v5099_v29 }
 0x60e   : > { %v5812_v55 = vpop.f32.mrf.mxu1 }
 0x60f   : > { %v5234_v33 = vadd.f32 %v5812_v55, %v5226_v18 }
 0x610   : > { %v5185_v24 = vpop.f32.mrf.mxu1 }
 0x611   : > { %v5249_v28 = vadd.f32 %v5510_v37, %v5234_v33  ;;  %v5232_v16 = vadd.f32 %v5224_v35, %v5185_v24 }
 0x612   : > { %v5813_v44 = vpop.f32.mrf.mxu1 }
 0x613   : > { %5257 = vst [vmem:[%s7883_s9 + $0x10] sm:$0xff] %v5249_v28  ;;  %v5247_v30 = vadd.f32 %v5510_v37, %v5232_v16  ;;  %v5235_v54 = vadd.f32 %v5813_v44, %v5227_v6 }
 0x614   : > { %v5188_v56 = vpop.f32.mrf.mxu1 }
 0x615   : > { %5255 = vst [vmem:[%s7883_s9] sm:$0xff] %v5247_v30  ;;  %v5250_v10 = vadd.f32 %v5510_v37, %v5235_v54  ;;  %v5233_v50 = vadd.f32 %v5225_v53, %v5188_v56 }
 0x616   : > { %v5804_v36 = vpop.f32.mrf.mxu0 }
 0x617   : > { %5258 = vst [vmem:[%s7883_s9 + $0x18] sm:$0xff] %v5250_v10  ;;  %v5248_v20 = vadd.f32 %v5510_v37, %v5233_v50  ;;  %v5230_v46 = vadd.f32 %v5804_v36, %v5222_v19 }
 0x618   : > { %v5112_v38 = vpop.f32.mrf.mxu0 }
 0x619   : > { %5256 = vst [vmem:[%s7883_s9 + $0x8] sm:$0xff] %v5248_v20  ;;  %v5228_v5 = vadd.f32 %v5220_v2, %v5112_v38 }
 0x61a   : > { %v5805_v26 = vpop.f32.mrf.mxu0 }
 0x61b   : > { %v5231_v52 = vadd.f32 %v5805_v26, %v5223_v40 }
 0x61c   : > { %v5115_v41 = vpop.f32.mrf.mxu0 }
 0x61d   : > { %v5229_v43 = vadd.f32 %v5221_v57, %v5115_v41 }
 0x61e   : > { %v5816_v39 = vpop.f32.mrf.mxu1 }
 0x61f   : > { %v5238_v0 = vadd.f32 %v5816_v39, %v5230_v46 }
 0x620   : > { %v5201_v32 = vpop.f32.mrf.mxu1 }
 0x621   : > { %v5253_v1 = vadd.f32 %v5510_v37, %v5238_v0  ;;  %v5236_v27 = vadd.f32 %v5228_v5, %v5201_v32 }
 0x622   : > { %v5817_v9 = vpop.f32.mrf.mxu1 }
 0x623   : > { %5261 = vst [vmem:[%s7883_s9 + $0x30] sm:$0xff] %v5253_v1  ;;  %v5251_v62 = vadd.f32 %v5510_v37, %v5236_v27  ;;  %v5239_v49 = vadd.f32 %v5817_v9, %v5231_v52 }
 0x624   : > { %v5204_v7 = vpop.f32.mrf.mxu1 }
 0x625   : > { %5259 = vst [vmem:[%s7883_s9 + $0x20] sm:$0xff] %v5251_v62  ;;  %v5254_v58 = vadd.f32 %v5510_v37, %v5239_v49  ;;  %v5237_v11 = vadd.f32 %v5229_v43, %v5204_v7 }
 0x627   : > { %5262 = vst [vmem:[%s7883_s9 + $0x38] sm:$0xff] %v5254_v58  ;;  %v5252_v25 = vadd.f32 %v5510_v37, %v5237_v11 }
 0x629   : > { %5260 = vst [vmem:[%s7883_s9 + $0x28] sm:$0xff] %v5252_v25 }
 0x62a   : > { %6176 = shalt.err (!%p6173_p9)
}
 0x62b   : > { %s6177_s20 = scalar_lea.hbm %s7898_s30, 1024  ;;  %s6181_s5 = scalar_lea.hbm %s7947_s4, 2048 }
 0x62c   : > { %p6178_p13 = scmp.ne.s32.totalorder %s7898_s30, %s6177_s20  ;;  %p6182_p4 = scmp.lt.s32.totalorder %s7898_s30, %s7947_s4 }
 0x62d   : > { %p6183_p8 = scmp.lt.s32.totalorder %s6181_s5, %s6177_s20 }
 0x62e   : > { %p6179_p5 = pnand %p6178_p13, %p7987_p10 }
 0x62f   : > { %p6184_p7 = por %p6183_p8, %p6182_p4 }
 0x630   : > { %p6180_p0 = pneg %p6179_p5 }
 0x632   : > { %p6185_p11 = pnand %p6184_p7, %p6180_p0 }
 0x634   : > { %6188 = shalt.err (!%p6185_p11)
}
 0x635   : > { %s6249_s9 = smov 128   ;;  %s6250_s26 = smov 8  }
 0x636   : > { %5844 = dma.vmem_to_hbm [thread:$0]  (%p7987_p10), %s7892_s27, 1024, %s7898_s30, %s5264_s6, %s6249_s9, %s6249_s9, %s6250_s26  }
 0x637 PF: > { %s5292_s28 = sand.u32 1, %s6219_s15   ;;  %p7988_p1 = scmp.ne.s32.totalorder %s7956_s22, 0 }
 0x638   : > { %p7989_p2 = scmp.ge.s32.totalorder %s6231_s18, 2  ;;  %s5293_s29 = scalar_lea.sflag [#allocation4], %s5292_s28 }
 0x63a   : > { %p5858_p6 = pnand %p7989_p2, %p7988_p1 }
 0x63c   : > { %p5859_p12 = pneg %p5858_p6 }
 0x63e   : > { %6214 = dma.done.wait (%p5859_p12), %s5293_s29, 1024  }
 0x63f   : > { %6216 = vsyncadd (%p5859_p12), %s5293_s29, 4294966272  ;;  %p18_p3 = scmp.ge.s32.totalorder %s6348_s13, 4   ;;  %s7990_s15 = smov %s6223_s16 }
 0x640   : > { %s7991_s16 = smov %s6227_s17  ;;  %s7992_s17 = smov %s6357_s24 }
 0x641   : > { %s7993_s18 = smov %s6348_s13  ;;  %20 = sbr.rel (!%p18_p3) target bundleno = 6 (0x6), region = 89 }
 0x646   :  { %5298 = vsyncpa [#allocation3], 1 }
 0x647   :  { %5300 = vsyncpa [#allocation3 + $0x1], 1 }
 0x648   :  { %5301 = vsyncpa [#allocation6], 1 }
 0x649   :  { %5302 = vsyncpa [#allocation4], 1 }
 0x64a   :  { %5304 = vsyncpa [#allocation4 + $0x1], 1 }

</bundles_post_ra>
